<compile_context>
chip_gen: v7x
topology: tpu7x:2x2x1
jax: 0.10.0
libtpu: 0.0.40
codegen_flags: <defaults>
</compile_context>

<pallas_src>
import functools

import jax
import jax.numpy as jnp
from jax import lax
from jax.experimental import pallas as pl
from jax.experimental.pallas import tpu as pltpu


# --------------------------------------------------------------------------
# small config (mirrors MyLlamaConfig semantics at toy sizes)
# --------------------------------------------------------------------------
class Cfg:
    n_embed = 64
    n_layer = 2
    n_q_head = 4
    n_kv_head = 2
    n_position = 64
    vocab_size = 512
    rms_norm_eps = 1e-6
    rope_theta = 10000.0

    @property
    def d_head(self):
        return self.n_embed // self.n_q_head

    @property
    def d_inner(self):
        # (int(n_embed * 8 / 3 / 64) + 1) * 64  -- same formula as the torch module
        return (int(self.n_embed * 8 / 3 / 64) + 1) * 64


def _row_tile(m):
    """Largest row tile that divides m and still gives >= 2 grid steps."""
    for c in (256, 128, 64, 32, 16, 8):
        if m % c == 0 and m // c >= 2:
            return c
    return m


def _nbytes(shape, dtype):
    n = 1
    for s in shape:
        n *= int(s)
    return n * jnp.dtype(dtype).itemsize


def _mosaic_params(semantics, block_bytes):
    """CompilerParams with an explicit scoped-VMEM limit derived from block sizes."""
    need = 2 * int(block_bytes) + (2 << 20)          # double-buffering + headroom
    limit = int(min(64 << 20, max(8 << 20, need)))   # stay under v7x's 64 MiB
    return pltpu.CompilerParams(dimension_semantics=semantics,
                                vmem_limit_bytes=limit)


def _rmsnorm(x, w, eps):
    """x: (R, D) f32, w: (1, D) f32."""
    var = jnp.mean(x * x, axis=-1, keepdims=True)
    return x * lax.rsqrt(var + eps) * w


# --------------------------------------------------------------------------
# kernel 1: attention block (RMSNorm -> fused QKV -> RoPE -> causal GQA -> O-proj
#           -> residual), one batch element per grid step
# --------------------------------------------------------------------------
def _attn_kernel(h_ref, ln1_ref, wqkv_ref, wo_ref, cos_ref, sin_ref, o_ref,
                 *, n_q_head, n_kv_head, d_head, eps):
    Hq, Hkv, Dh = n_q_head, n_kv_head, d_head
    n_rep = Hq // Hkv
    scale = Dh ** -0.5
    half = Dh // 2

    h = h_ref[0].astype(jnp.float32)                       # (S, D) residual in f32
    S = h.shape[0]
    cos = cos_ref[...]                                      # (S, Dh) f32
    sin = sin_ref[...]                                      # (S, Dh) f32, sign folded in

    def rope(x):                                            # x: (S, Dh) f32
        # HF rotate_half with the +/-1 sign folded into the sin table, so the
        # rotated term is just a (un-negated) half swap.
        # TODO(synk): with Dh=128 at production sizes use pltpu.roll(x, half, -1)
        #             so the rotate rides the XLU slot instead of a concat copy.
        xr = jnp.concatenate([x[:, half:], x[:, :half]], axis=-1)
        return x * cos + xr * sin

    # --- fused QKV projection (bf16 inputs, f32 accumulation) -----------------
    x = _rmsnorm(h, ln1_ref[...], eps).astype(jnp.bfloat16)
    qkv = jnp.dot(x, wqkv_ref[...], preferred_element_type=jnp.float32)

    k_off = Hq * Dh
    v_off = (Hq + Hkv) * Dh

    # RoPE applied once per kv head (GQA reuse via slicing, no repeat_kv copy).
    # TODO(synk): at production Dh (=128) each head slice lands on a lane tile;
    #             here Dh=16 so slices are sub-lane-tile (toy sizes only).
    k_heads = [rope(qkv[:, k_off + hk * Dh:k_off + (hk + 1) * Dh]).astype(jnp.bfloat16)
               for hk in range(Hkv)]
    v_heads = [qkv[:, v_off + hk * Dh:v_off + (hk + 1) * Dh].astype(jnp.bfloat16)
               for hk in range(Hkv)]

    qi = lax.broadcasted_iota(jnp.int32, (S, S), 0)
    kj = lax.broadcasted_iota(jnp.int32, (S, S), 1)
    causal = kj <= qi

    # Residual + per-head accumulation into the O-projection (no head concat).
    acc = h
    for hq in range(Hq):
        qh = rope(qkv[:, hq * Dh:(hq + 1) * Dh]).astype(jnp.bfloat16)
        kv = hq // n_rep
        s = lax.dot_general(qh, k_heads[kv], (((1,), (1,)), ((), ())),
                            preferred_element_type=jnp.float32) * scale  # (S, S)
        s = jnp.where(causal, s, -1e30)
        m = jnp.max(s, axis=-1, keepdims=True)
        p = jnp.exp(s - m)
        p = p * pl.reciprocal(jnp.sum(p, axis=-1, keepdims=True), approx=True)
        out_h = jnp.dot(p.astype(jnp.bfloat16), v_heads[kv],
                        preferred_element_type=jnp.float32)              # (S, Dh)
        acc = acc + jnp.dot(out_h.astype(jnp.bfloat16),
                            wo_ref[hq * Dh:(hq + 1) * Dh, :],
                            preferred_element_type=jnp.float32)          # (S, D)

    o_ref[0] = acc.astype(o_ref.dtype)


def fused_attention(h, ln1, wqkv, wo, cos, sin, cfg: Cfg):
    B, S, D = h.shape
    Nqkv = wqkv.shape[1]
    Dh = cfg.d_head
    kern = functools.partial(_attn_kernel, n_q_head=cfg.n_q_head,
                             n_kv_head=cfg.n_kv_head, d_head=Dh,
                             eps=cfg.rms_norm_eps)
    blk_bytes = (2 * _nbytes((S, D), h.dtype) + _nbytes(ln1.shape, ln1.dtype)
                 + _nbytes(wqkv.shape, wqkv.dtype) + _nbytes(wo.shape, wo.dtype)
                 + _nbytes(cos.shape, cos.dtype) + _nbytes(sin.shape, sin.dtype))
    # TODO(synk): at production S / D, flash-tile attention over (q-tile, kv-tile)
    #             grid axes and K-tile the QKV / O projections so per-step VMEM
    #             fits v7x's 64 MiB; whole blocks are fine at these toy sizes.
    # TODO(synk): mark the constant weight/table specs pipeline_mode=pl.Buffered(1)
    #             to drop their second pipeline buffer once confirmed supported.
    return pl.pallas_call(
        kern,
        out_shape=jax.ShapeDtypeStruct((B, S, D), h.dtype),
        grid_spec=pltpu.PrefetchScalarGridSpec(
            num_scalar_prefetch=0,
            grid=(B,),
            in_specs=[
                pl.BlockSpec((1, S, D), lambda b: (b, 0, 0)),            # hidden slab
                pl.BlockSpec((1, D), lambda b: (0, 0)),                  # ln1
                pl.BlockSpec((D, Nqkv), lambda b: (0, 0)),               # fused QKV
                pl.BlockSpec((cfg.n_q_head * Dh, D), lambda b: (0, 0)),  # O proj
                pl.BlockSpec((S, Dh), lambda b: (0, 0)),                 # rope cos
                pl.BlockSpec((S, Dh), lambda b: (0, 0)),                 # rope sin
            ],
            out_specs=pl.BlockSpec((1, S, D), lambda b: (b, 0, 0)),
        ),
        input_output_aliases={0: 0},          # update hidden state in place
        compiler_params=_mosaic_params(("parallel",), blk_bytes),
    )(h, ln1, wqkv, wo, cos, sin)


# --------------------------------------------------------------------------
# kernel 2: MLP block (RMSNorm -> fused SwiGLU -> down-proj -> residual),
#           row-tiled over the flattened (B*S, D) hidden state
# --------------------------------------------------------------------------
def _mlp_kernel(h_ref, ln2_ref, wgu_ref, wd_ref, o_ref, *, d_inner, eps):
    Di = d_inner
    h = h_ref[...].astype(jnp.float32)                                   # (tm, D)
    x = _rmsnorm(h, ln2_ref[...], eps).astype(jnp.bfloat16)
    gu = jnp.dot(x, wgu_ref[...], preferred_element_type=jnp.float32)    # (tm, 2*Di)
    g = gu[:, :Di]
    u = gu[:, Di:]
    mlp = (jax.nn.sigmoid(g) * g * u).astype(jnp.bfloat16)               # SiLU(g)*u
    out = h + jnp.dot(mlp, wd_ref[...], preferred_element_type=jnp.float32)
    o_ref[...] = out.astype(o_ref.dtype)


def fused_mlp(h2d, ln2, wgu, wd, cfg: Cfg):
    M, D = h2d.shape
    Di = cfg.d_inner
    tm = _row_tile(M)
    n_tiles = M // tm
    kern = functools.partial(_mlp_kernel, d_inner=Di, eps=cfg.rms_norm_eps)
    blk_bytes = (2 * _nbytes((tm, D), h2d.dtype) + _nbytes(ln2.shape, ln2.dtype)
                 + _nbytes(wgu.shape, wgu.dtype) + _nbytes(wd.shape, wd.dtype))
    # TODO(synk): at production d_inner, add an 'arbitrary' grid axis tiling Di
    #             (separate gate/up slices, f32 (tm, D) accumulator scratch).
    return pl.pallas_call(
        kern,
        out_shape=jax.ShapeDtypeStruct((M, D), h2d.dtype),
        grid_spec=pltpu.PrefetchScalarGridSpec(
            num_scalar_prefetch=0,
            grid=(n_tiles,),
            in_specs=[
                pl.BlockSpec((tm, D), lambda i: (i, 0)),                 # hidden rows
                pl.BlockSpec((1, D), lambda i: (0, 0)),                  # ln2
                pl.BlockSpec((D, 2 * Di), lambda i: (0, 0)),             # gate|up
                pl.BlockSpec((Di, D), lambda i: (0, 0)),                 # down proj
            ],
            out_specs=pl.BlockSpec((tm, D), lambda i: (i, 0)),
        ),
        input_output_aliases={0: 0},          # update hidden state in place
        compiler_params=_mosaic_params(("parallel",), blk_bytes),
    )(h2d, ln2, wgu, wd)


# --------------------------------------------------------------------------
# kernel 3: final RMSNorm + tied lm_head + cross-entropy terms (fused tail)
# --------------------------------------------------------------------------
def _head_kernel(h_ref, lnf_ref, emb_ref, tgt_ref,
                 logits_ref, loss_ref, valid_ref, *, eps):
    h = h_ref[...].astype(jnp.float32)                                   # (tm, D)
    hn = _rmsnorm(h, lnf_ref[...], eps).astype(jnp.bfloat16)
    # tied lm_head: hn @ embed.T, contracting D on both sides so the (V, D)
    # table is read in its stored layout (no transposed HBM copy).
    logits = lax.dot_general(hn, emb_ref[...], (((1,), (1,)), ((), ())),
                             preferred_element_type=jnp.float32)         # (tm, V)
    logits_ref[...] = logits.astype(logits_ref.dtype)

    # cross entropy with ignore_index = -1, computed from the in-VMEM logits
    tgt = tgt_ref[...]                                                   # (tm, 1)
    m = jnp.max(logits, axis=-1, keepdims=True)
    lse = jnp.log(jnp.sum(jnp.exp(logits - m), axis=-1, keepdims=True)) + m
    col = lax.broadcasted_iota(jnp.int32, logits.shape, 1)
    onehot = (col == tgt).astype(jnp.float32)
    tgt_logit = jnp.sum(onehot * logits, axis=-1, keepdims=True)
    valid = (tgt != -1).astype(jnp.float32)
    row_loss = (lse - tgt_logit) * valid

    # lane-dense per-tile partial sums: one full (1, 1, 128) lane row, partial
    # sum in lane 0, zeros elsewhere (no masked (tm, 1) vst.msk stores).
    lane = lax.broadcasted_iota(jnp.int32, (1, 1, 128), 2)
    loss_ref[...] = jnp.where(lane == 0, jnp.sum(row_loss), 0.0)
    valid_ref[...] = jnp.where(lane == 0, jnp.sum(valid), 0.0)


def fused_head(h2d, lnf, emb, targets, eps):
    M, D = h2d.shape
    V = emb.shape[0]
    tm = _row_tile(M)
    n_tiles = M // tm
    tgt = targets.reshape(M, 1).astype(jnp.int32)
    blk_bytes = (_nbytes((tm, D), h2d.dtype) + _nbytes(lnf.shape, lnf.dtype)
                 + _nbytes(emb.shape, emb.dtype) + _nbytes((tm, 1), jnp.int32)
                 + _nbytes((tm, V), jnp.float32) + 2 * _nbytes((1, 1, 128), jnp.float32))
    # TODO(synk): at production vocab sizes, add an 'arbitrary' vocab-tile grid
    #             axis with an online log-sum-exp (stream (V_tile, D) slices of
    #             the table) and write logits as bf16 or skip them (loss-only).
    logits, loss_parts, valid_parts = pl.pallas_call(
        functools.partial(_head_kernel, eps=eps),
        out_shape=(jax.ShapeDtypeStruct((M, V), jnp.float32),
                   jax.ShapeDtypeStruct((n_tiles, 1, 128), jnp.float32),
                   jax.ShapeDtypeStruct((n_tiles, 1, 128), jnp.float32)),
        grid_spec=pltpu.PrefetchScalarGridSpec(
            num_scalar_prefetch=0,
            grid=(n_tiles,),
            in_specs=[pl.BlockSpec((tm, D), lambda i: (i, 0)),
                      pl.BlockSpec((1, D), lambda i: (0, 0)),
                      pl.BlockSpec((V, D), lambda i: (0, 0)),
                      pl.BlockSpec((tm, 1), lambda i: (i, 0))],
            out_specs=(pl.BlockSpec((tm, V), lambda i: (i, 0)),
                       pl.BlockSpec((1, 1, 128), lambda i: (i, 0, 0)),
                       pl.BlockSpec((1, 1, 128), lambda i: (i, 0, 0)))),
        compiler_params=_mosaic_params(("parallel",), blk_bytes),
    )(h2d, lnf, emb, tgt)
    # tiny scalar reduction over per-tile partial sums stays in JAX glue
    loss = jnp.sum(loss_parts) / jnp.sum(valid_parts)
    return logits, loss


# --------------------------------------------------------------------------
# glue: RoPE tables, parameter init, full forward
# --------------------------------------------------------------------------
def rope_tables(S, Dh, theta):
    inv_freq = 1.0 / (theta ** (jnp.arange(0, Dh, 2, dtype=jnp.float32) / Dh))
    pos = jnp.arange(S, dtype=jnp.float32)
    freqs = pos[:, None] * inv_freq[None, :]
    emb = jnp.concatenate([freqs, freqs], axis=-1)          # (S, Dh)
    cos = jnp.cos(emb)
    sin = jnp.sin(emb)
    # fold the rotate_half sign ([-x2, x1]) into the sin table: [-sin | +sin]
    half = Dh // 2
    sign = jnp.concatenate([-jnp.ones((half,), jnp.float32),
                            jnp.ones((half,), jnp.float32)])
    return cos, sin * sign[None, :]


def init_params(key, cfg: Cfg):
    D, V = cfg.n_embed, cfg.vocab_size
    Dh, Hq, Hkv, Di = cfg.d_head, cfg.n_q_head, cfg.n_kv_head, cfg.d_inner
    std = 0.02
    wdt = jnp.bfloat16            # bf16 weights; f32 accumulation in-kernel
    keys = jax.random.split(key, 1 + 7 * cfg.n_layer)
    params = {
        "embed": (jax.random.normal(keys[0], (V, D), jnp.float32) * std).astype(wdt),
        "ln_f": jnp.ones((1, D), jnp.float32),
        "layers": [],
    }
    ki = 1
    for _ in range(cfg.n_layer):
        wq = jax.random.normal(keys[ki + 0], (D, Hq * Dh), jnp.float32) * std
        wk = jax.random.normal(keys[ki + 1], (D, Hkv * Dh), jnp.float32) * std
        wv = jax.random.normal(keys[ki + 2], (D, Hkv * Dh), jnp.float32) * std
        wg = jax.random.normal(keys[ki + 4], (D, Di), jnp.float32) * std
        wu = jax.random.normal(keys[ki + 5], (D, Di), jnp.float32) * std
        lyr = {
            # weights pre-concatenated once at init -> single fused matmuls in-kernel
            "wqkv": jnp.concatenate([wq, wk, wv], axis=1).astype(wdt),
            "wo": (jax.random.normal(keys[ki + 3], (Hq * Dh, D), jnp.float32)
                   * std).astype(wdt),
            "wgu": jnp.concatenate([wg, wu], axis=1).astype(wdt),
            "wd": (jax.random.normal(keys[ki + 6], (Di, D), jnp.float32)
                   * std).astype(wdt),
            "ln1": jnp.ones((1, D), jnp.float32),
            "ln2": jnp.ones((1, D), jnp.float32),
        }
        params["layers"].append(lyr)
        ki += 7
    return params


def myllama_forward(params, input_ids, targets, cfg: Cfg):
    B, S = input_ids.shape
    D, V = cfg.n_embed, cfg.vocab_size
    M = B * S

    # TODO(synk): embedding row gather stays in plain JAX glue (data-dependent gather).
    h = params["embed"][input_ids]                          # (B, S, D) bf16
    cos, sin = rope_tables(S, cfg.d_head, cfg.rope_theta)

    for lyr in params["layers"]:
        h = fused_attention(h, lyr["ln1"], lyr["wqkv"], lyr["wo"], cos, sin, cfg)
        h = fused_mlp(h.reshape(M, D), lyr["ln2"], lyr["wgu"], lyr["wd"],
                      cfg).reshape(B, S, D)

    logits, loss = fused_head(h.reshape(M, D), params["ln_f"],
                              params["embed"], targets, cfg.rms_norm_eps)
    return logits.reshape(B, S, V), loss


# --------------------------------------------------------------------------
if __name__ == "__main__":
    cfg = Cfg()
    B, S = 2, 16

    key = jax.random.PRNGKey(0)
    kp, ki, kt = jax.random.split(key, 3)

    params = init_params(kp, cfg)
    input_ids = jax.random.randint(ki, (B, S), 0, cfg.vocab_size, dtype=jnp.int32)
    targets = jax.random.randint(kt, (B, S), 0, cfg.vocab_size, dtype=jnp.int32)
    targets = targets.at[0, 0].set(-1)                      # exercise ignore_index=-1

    fwd = jax.jit(functools.partial(myllama_forward, cfg=cfg))
    logits, loss = fwd(params, input_ids, targets)
    jax.block_until_ready((logits, loss))

    assert logits.shape == (B, S, cfg.vocab_size)
    assert bool(jnp.isfinite(loss))
    print("KERNEL_OK")
</pallas_src>

<mosaic_0001>
module attributes {stable_mosaic.version = 11 : i64} {
  func.func @_attn_kernel(%arg0: i32, %arg1: memref<1x16x64xbf16, #tpu.memory_space<vmem>>, %arg2: memref<1x64xf32, #tpu.memory_space<vmem>>, %arg3: memref<64x128xbf16, #tpu.memory_space<vmem>>, %arg4: memref<64x64xbf16, #tpu.memory_space<vmem>>, %arg5: memref<16x16xf32, #tpu.memory_space<vmem>>, %arg6: memref<16x16xf32, #tpu.memory_space<vmem>>, %arg7: memref<1x16x64xbf16, #tpu.memory_space<vmem>>) attributes {dimension_semantics = [#tpu.dimension_semantics<parallel>], iteration_bounds = array<i64: 2>, scalar_prefetch = 0 : i64, scratch_operands = 0 : i64, tpu.core_type = #tpu.core_type<tc>, window_params = [{transform_indices = @transform_0, window_bounds = array<i64: 1, 16, 64>}, {pipeline_mode = #tpu.pipeline_mode<synchronous>, transform_indices = @transform_1, window_bounds = array<i64: 1, 64>}, {pipeline_mode = #tpu.pipeline_mode<synchronous>, transform_indices = @transform_2, window_bounds = array<i64: 64, 128>}, {pipeline_mode = #tpu.pipeline_mode<synchronous>, transform_indices = @transform_3, window_bounds = array<i64: 64, 64>}, {pipeline_mode = #tpu.pipeline_mode<synchronous>, transform_indices = @transform_4, window_bounds = array<i64: 16, 16>}, {pipeline_mode = #tpu.pipeline_mode<synchronous>, transform_indices = @transform_5, window_bounds = array<i64: 16, 16>}, {transform_indices = @transform_6, window_bounds = array<i64: 1, 16, 64>}]} {
    %c0 = arith.constant 0 : index
    %c0_0 = arith.constant 0 : index
    %c0_1 = arith.constant 0 : index
    %0 = vector.load %arg1[%c0, %c0_0, %c0_1] : memref<1x16x64xbf16, #tpu.memory_space<vmem>>, vector<1x16x64xbf16>
    %1 = vector.shape_cast %0 : vector<1x16x64xbf16> to vector<16x64xbf16>
    %2 = arith.extf %1 : vector<16x64xbf16> to vector<16x64xf32>
    %c0_2 = arith.constant 0 : index
    %c0_3 = arith.constant 0 : index
    %3 = vector.load %arg5[%c0_2, %c0_3] : memref<16x16xf32, #tpu.memory_space<vmem>>, vector<16x16xf32>
    %c0_4 = arith.constant 0 : index
    %c0_5 = arith.constant 0 : index
    %4 = vector.load %arg6[%c0_4, %c0_5] : memref<16x16xf32, #tpu.memory_space<vmem>>, vector<16x16xf32>
    %c0_6 = arith.constant 0 : index
    %c0_7 = arith.constant 0 : index
    %5 = vector.load %arg2[%c0_6, %c0_7] : memref<1x64xf32, #tpu.memory_space<vmem>>, vector<1x64xf32>
    %6 = arith.mulf %2, %2 : vector<16x64xf32>
    %cst = arith.constant dense<0.000000e+00> : vector<16xf32>
    %7 = vector.multi_reduction <add>, %6, %cst [1] : vector<16x64xf32> to vector<16xf32>
    %8 = vector.shape_cast %7 : vector<16xf32> to vector<16x1xf32>
    %cst_8 = arith.constant 6.400000e+01 : f32
    %9 = vector.broadcast %cst_8 : f32 to vector<16x1xf32>
    %10 = arith.divf %8, %9 : vector<16x1xf32>
    %cst_9 = arith.constant 9.99999997E-7 : f32
    %11 = vector.broadcast %cst_9 : f32 to vector<16x1xf32>
    %12 = arith.addf %10, %11 : vector<16x1xf32>
    %13 = math.rsqrt %12 : vector<16x1xf32>
    %14 = vector.broadcast %13 : vector<16x1xf32> to vector<16x64xf32>
    %15 = arith.mulf %2, %14 : vector<16x64xf32>
    %16 = vector.broadcast %5 : vector<1x64xf32> to vector<16x64xf32>
    %17 = arith.mulf %15, %16 : vector<16x64xf32>
    %18 = arith.truncf %17 : vector<16x64xf32> to vector<16x64xbf16>
    %c0_10 = arith.constant 0 : index
    %c0_11 = arith.constant 0 : index
    %19 = vector.load %arg3[%c0_10, %c0_11] : memref<64x128xbf16, #tpu.memory_space<vmem>>, vector<64x128xbf16>
    %cst_12 = arith.constant dense<0.000000e+00> : vector<16x128xf32>
    %20 = tpu.matmul %18, %19, %cst_12 {dimension_numbers = #tpu.dot_dimension_numbers<[1], [0], [0], [1], [0, 0, 1, 1], [], []>} : vector<16x64xbf16>, vector<64x128xbf16>, vector<16x128xf32> -> vector<16x128xf32>
    %21 = vector.extract_strided_slice %20 {offsets = [0, 64], sizes = [16, 16], strides = [1, 1]} : vector<16x128xf32> to vector<16x16xf32>
    %22 = vector.extract_strided_slice %21 {offsets = [0, 8], sizes = [16, 8], strides = [1, 1]} : vector<16x16xf32> to vector<16x8xf32>
    %23 = vector.extract_strided_slice %21 {offsets = [0, 0], sizes = [16, 8], strides = [1, 1]} : vector<16x16xf32> to vector<16x8xf32>
    %24 = tpu.concatenate %22, %23 in 1 : vector<16x8xf32>, vector<16x8xf32> -> vector<16x16xf32>
    %25 = arith.mulf %21, %3 : vector<16x16xf32>
    %26 = arith.mulf %24, %4 : vector<16x16xf32>
    %27 = arith.addf %25, %26 : vector<16x16xf32>
    %28 = arith.truncf %27 : vector<16x16xf32> to vector<16x16xbf16>
    %29 = vector.extract_strided_slice %20 {offsets = [0, 80], sizes = [16, 16], strides = [1, 1]} : vector<16x128xf32> to vector<16x16xf32>
    %30 = vector.extract_strided_slice %29 {offsets = [0, 8], sizes = [16, 8], strides = [1, 1]} : vector<16x16xf32> to vector<16x8xf32>
    %31 = vector.extract_strided_slice %29 {offsets = [0, 0], sizes = [16, 8], strides = [1, 1]} : vector<16x16xf32> to vector<16x8xf32>
    %32 = tpu.concatenate %30, %31 in 1 : vector<16x8xf32>, vector<16x8xf32> -> vector<16x16xf32>
    %33 = arith.mulf %29, %3 : vector<16x16xf32>
    %34 = arith.mulf %32, %4 : vector<16x16xf32>
    %35 = arith.addf %33, %34 : vector<16x16xf32>
    %36 = arith.truncf %35 : vector<16x16xf32> to vector<16x16xbf16>
    %37 = vector.extract_strided_slice %20 {offsets = [0, 96], sizes = [16, 16], strides = [1, 1]} : vector<16x128xf32> to vector<16x16xf32>
    %38 = arith.truncf %37 : vector<16x16xf32> to vector<16x16xbf16>
    %39 = vector.extract_strided_slice %20 {offsets = [0, 112], sizes = [16, 16], strides = [1, 1]} : vector<16x128xf32> to vector<16x16xf32>
    %40 = arith.truncf %39 : vector<16x16xf32> to vector<16x16xbf16>
    %41 = tpu.iota {dimensions = array<i32: 0>} : vector<16x16xi32>
    %42 = tpu.iota {dimensions = array<i32: 1>} : vector<16x16xi32>
    %43 = arith.cmpi sle, %42, %41 : vector<16x16xi32>
    %44 = vector.extract_strided_slice %20 {offsets = [0, 0], sizes = [16, 16], strides = [1, 1]} : vector<16x128xf32> to vector<16x16xf32>
    %45 = vector.extract_strided_slice %44 {offsets = [0, 8], sizes = [16, 8], strides = [1, 1]} : vector<16x16xf32> to vector<16x8xf32>
    %46 = vector.extract_strided_slice %44 {offsets = [0, 0], sizes = [16, 8], strides = [1, 1]} : vector<16x16xf32> to vector<16x8xf32>
    %47 = tpu.concatenate %45, %46 in 1 : vector<16x8xf32>, vector<16x8xf32> -> vector<16x16xf32>
    %48 = arith.mulf %44, %3 : vector<16x16xf32>
    %49 = arith.mulf %47, %4 : vector<16x16xf32>
    %50 = arith.addf %48, %49 : vector<16x16xf32>
    %51 = arith.truncf %50 : vector<16x16xf32> to vector<16x16xbf16>
    %cst_13 = arith.constant dense<0.000000e+00> : vector<16x16xf32>
    %52 = tpu.matmul %51, %28, %cst_13 {dimension_numbers = #tpu.dot_dimension_numbers<[1], [1], [0], [0], [0, 0, 1, 0], [], []>} : vector<16x16xbf16>, vector<16x16xbf16>, vector<16x16xf32> -> vector<16x16xf32>
    %cst_14 = arith.constant 2.500000e-01 : f32
    %53 = vector.broadcast %cst_14 : f32 to vector<16x16xf32>
    %54 = arith.mulf %52, %53 : vector<16x16xf32>
    %cst_15 = arith.constant -1.000000e+30 : f32
    %55 = vector.broadcast %cst_15 : f32 to vector<16x16xf32>
    %56 = arith.select %43, %54, %55 : vector<16x16xi1>, vector<16x16xf32>
    %cst_16 = arith.constant dense<0xFF800000> : vector<16xf32>
    %57 = vector.multi_reduction <maximumf>, %56, %cst_16 [1] : vector<16x16xf32> to vector<16xf32>
    %58 = vector.shape_cast %57 : vector<16xf32> to vector<16x1xf32>
    %59 = vector.broadcast %58 : vector<16x1xf32> to vector<16x16xf32>
    %60 = arith.subf %56, %59 : vector<16x16xf32>
    %61 = math.exp %60 : vector<16x16xf32>
    %cst_17 = arith.constant dense<0.000000e+00> : vector<16xf32>
    %62 = vector.multi_reduction <add>, %61, %cst_17 [1] : vector<16x16xf32> to vector<16xf32>
    %63 = vector.shape_cast %62 : vector<16xf32> to vector<16x1xf32>
    %64 = tpu.reciprocal %63 {approx = true} : vector<16x1xf32> -> vector<16x1xf32>
    %65 = vector.broadcast %64 : vector<16x1xf32> to vector<16x16xf32>
    %66 = arith.mulf %61, %65 : vector<16x16xf32>
    %67 = arith.truncf %66 : vector<16x16xf32> to vector<16x16xbf16>
    %cst_18 = arith.constant dense<0.000000e+00> : vector<16x16xf32>
    %68 = tpu.matmul %67, %38, %cst_18 {dimension_numbers = #tpu.dot_dimension_numbers<[1], [0], [0], [1], [0, 0, 1, 1], [], []>} : vector<16x16xbf16>, vector<16x16xbf16>, vector<16x16xf32> -> vector<16x16xf32>
    %69 = arith.truncf %68 : vector<16x16xf32> to vector<16x16xbf16>
    %c0_19 = arith.constant 0 : index
    %c0_20 = arith.constant 0 : index
    %70 = vector.load %arg4[%c0_19, %c0_20] : memref<64x64xbf16, #tpu.memory_space<vmem>>, vector<16x64xbf16>
    %cst_21 = arith.constant dense<0.000000e+00> : vector<16x64xf32>
    %71 = tpu.matmul %69, %70, %cst_21 {dimension_numbers = #tpu.dot_dimension_numbers<[1], [0], [0], [1], [0, 0, 1, 1], [], []>} : vector<16x16xbf16>, vector<16x64xbf16>, vector<16x64xf32> -> vector<16x64xf32>
    %72 = arith.addf %2, %71 : vector<16x64xf32>
    %73 = vector.extract_strided_slice %20 {offsets = [0, 16], sizes = [16, 16], strides = [1, 1]} : vector<16x128xf32> to vector<16x16xf32>
    %74 = vector.extract_strided_slice %73 {offsets = [0, 8], sizes = [16, 8], strides = [1, 1]} : vector<16x16xf32> to vector<16x8xf32>
    %75 = vector.extract_strided_slice %73 {offsets = [0, 0], sizes = [16, 8], strides = [1, 1]} : vector<16x16xf32> to vector<16x8xf32>
    %76 = tpu.concatenate %74, %75 in 1 : vector<16x8xf32>, vector<16x8xf32> -> vector<16x16xf32>
    %77 = arith.mulf %73, %3 : vector<16x16xf32>
    %78 = arith.mulf %76, %4 : vector<16x16xf32>
    %79 = arith.addf %77, %78 : vector<16x16xf32>
    %80 = arith.truncf %79 : vector<16x16xf32> to vector<16x16xbf16>
    %cst_22 = arith.constant dense<0.000000e+00> : vector<16x16xf32>
    %81 = tpu.matmul %80, %28, %cst_22 {dimension_numbers = #tpu.dot_dimension_numbers<[1], [1], [0], [0], [0, 0, 1, 0], [], []>} : vector<16x16xbf16>, vector<16x16xbf16>, vector<16x16xf32> -> vector<16x16xf32>
    %cst_23 = arith.constant 2.500000e-01 : f32
    %82 = vector.broadcast %cst_23 : f32 to vector<16x16xf32>
    %83 = arith.mulf %81, %82 : vector<16x16xf32>
    %cst_24 = arith.constant -1.000000e+30 : f32
    %84 = vector.broadcast %cst_24 : f32 to vector<16x16xf32>
    %85 = arith.select %43, %83, %84 : vector<16x16xi1>, vector<16x16xf32>
    %cst_25 = arith.constant dense<0xFF800000> : vector<16xf32>
    %86 = vector.multi_reduction <maximumf>, %85, %cst_25 [1] : vector<16x16xf32> to vector<16xf32>
    %87 = vector.shape_cast %86 : vector<16xf32> to vector<16x1xf32>
    %88 = vector.broadcast %87 : vector<16x1xf32> to vector<16x16xf32>
    %89 = arith.subf %85, %88 : vector<16x16xf32>
    %90 = math.exp %89 : vector<16x16xf32>
    %cst_26 = arith.constant dense<0.000000e+00> : vector<16xf32>
    %91 = vector.multi_reduction <add>, %90, %cst_26 [1] : vector<16x16xf32> to vector<16xf32>
    %92 = vector.shape_cast %91 : vector<16xf32> to vector<16x1xf32>
    %93 = tpu.reciprocal %92 {approx = true} : vector<16x1xf32> -> vector<16x1xf32>
    %94 = vector.broadcast %93 : vector<16x1xf32> to vector<16x16xf32>
    %95 = arith.mulf %90, %94 : vector<16x16xf32>
    %96 = arith.truncf %95 : vector<16x16xf32> to vector<16x16xbf16>
    %cst_27 = arith.constant dense<0.000000e+00> : vector<16x16xf32>
    %97 = tpu.matmul %96, %38, %cst_27 {dimension_numbers = #tpu.dot_dimension_numbers<[1], [0], [0], [1], [0, 0, 1, 1], [], []>} : vector<16x16xbf16>, vector<16x16xbf16>, vector<16x16xf32> -> vector<16x16xf32>
    %98 = arith.truncf %97 : vector<16x16xf32> to vector<16x16xbf16>
    %c16 = arith.constant 16 : index
    %c0_28 = arith.constant 0 : index
    %99 = vector.load %arg4[%c16, %c0_28] : memref<64x64xbf16, #tpu.memory_space<vmem>>, vector<16x64xbf16>
    %cst_29 = arith.constant dense<0.000000e+00> : vector<16x64xf32>
    %100 = tpu.matmul %98, %99, %cst_29 {dimension_numbers = #tpu.dot_dimension_numbers<[1], [0], [0], [1], [0, 0, 1, 1], [], []>} : vector<16x16xbf16>, vector<16x64xbf16>, vector<16x64xf32> -> vector<16x64xf32>
    %101 = arith.addf %72, %100 : vector<16x64xf32>
    %102 = vector.extract_strided_slice %20 {offsets = [0, 32], sizes = [16, 16], strides = [1, 1]} : vector<16x128xf32> to vector<16x16xf32>
    %103 = vector.extract_strided_slice %102 {offsets = [0, 8], sizes = [16, 8], strides = [1, 1]} : vector<16x16xf32> to vector<16x8xf32>
    %104 = vector.extract_strided_slice %102 {offsets = [0, 0], sizes = [16, 8], strides = [1, 1]} : vector<16x16xf32> to vector<16x8xf32>
    %105 = tpu.concatenate %103, %104 in 1 : vector<16x8xf32>, vector<16x8xf32> -> vector<16x16xf32>
    %106 = arith.mulf %102, %3 : vector<16x16xf32>
    %107 = arith.mulf %105, %4 : vector<16x16xf32>
    %108 = arith.addf %106, %107 : vector<16x16xf32>
    %109 = arith.truncf %108 : vector<16x16xf32> to vector<16x16xbf16>
    %cst_30 = arith.constant dense<0.000000e+00> : vector<16x16xf32>
    %110 = tpu.matmul %109, %36, %cst_30 {dimension_numbers = #tpu.dot_dimension_numbers<[1], [1], [0], [0], [0, 0, 1, 0], [], []>} : vector<16x16xbf16>, vector<16x16xbf16>, vector<16x16xf32> -> vector<16x16xf32>
    %cst_31 = arith.constant 2.500000e-01 : f32
    %111 = vector.broadcast %cst_31 : f32 to vector<16x16xf32>
    %112 = arith.mulf %110, %111 : vector<16x16xf32>
    %cst_32 = arith.constant -1.000000e+30 : f32
    %113 = vector.broadcast %cst_32 : f32 to vector<16x16xf32>
    %114 = arith.select %43, %112, %113 : vector<16x16xi1>, vector<16x16xf32>
    %cst_33 = arith.constant dense<0xFF800000> : vector<16xf32>
    %115 = vector.multi_reduction <maximumf>, %114, %cst_33 [1] : vector<16x16xf32> to vector<16xf32>
    %116 = vector.shape_cast %115 : vector<16xf32> to vector<16x1xf32>
    %117 = vector.broadcast %116 : vector<16x1xf32> to vector<16x16xf32>
    %118 = arith.subf %114, %117 : vector<16x16xf32>
    %119 = math.exp %118 : vector<16x16xf32>
    %cst_34 = arith.constant dense<0.000000e+00> : vector<16xf32>
    %120 = vector.multi_reduction <add>, %119, %cst_34 [1] : vector<16x16xf32> to vector<16xf32>
    %121 = vector.shape_cast %120 : vector<16xf32> to vector<16x1xf32>
    %122 = tpu.reciprocal %121 {approx = true} : vector<16x1xf32> -> vector<16x1xf32>
    %123 = vector.broadcast %122 : vector<16x1xf32> to vector<16x16xf32>
    %124 = arith.mulf %119, %123 : vector<16x16xf32>
    %125 = arith.truncf %124 : vector<16x16xf32> to vector<16x16xbf16>
    %cst_35 = arith.constant dense<0.000000e+00> : vector<16x16xf32>
    %126 = tpu.matmul %125, %40, %cst_35 {dimension_numbers = #tpu.dot_dimension_numbers<[1], [0], [0], [1], [0, 0, 1, 1], [], []>} : vector<16x16xbf16>, vector<16x16xbf16>, vector<16x16xf32> -> vector<16x16xf32>
    %127 = arith.truncf %126 : vector<16x16xf32> to vector<16x16xbf16>
    %c32 = arith.constant 32 : index
    %c0_36 = arith.constant 0 : index
    %128 = vector.load %arg4[%c32, %c0_36] : memref<64x64xbf16, #tpu.memory_space<vmem>>, vector<16x64xbf16>
    %cst_37 = arith.constant dense<0.000000e+00> : vector<16x64xf32>
    %129 = tpu.matmul %127, %128, %cst_37 {dimension_numbers = #tpu.dot_dimension_numbers<[1], [0], [0], [1], [0, 0, 1, 1], [], []>} : vector<16x16xbf16>, vector<16x64xbf16>, vector<16x64xf32> -> vector<16x64xf32>
    %130 = arith.addf %101, %129 : vector<16x64xf32>
    %131 = vector.extract_strided_slice %20 {offsets = [0, 48], sizes = [16, 16], strides = [1, 1]} : vector<16x128xf32> to vector<16x16xf32>
    %132 = vector.extract_strided_slice %131 {offsets = [0, 8], sizes = [16, 8], strides = [1, 1]} : vector<16x16xf32> to vector<16x8xf32>
    %133 = vector.extract_strided_slice %131 {offsets = [0, 0], sizes = [16, 8], strides = [1, 1]} : vector<16x16xf32> to vector<16x8xf32>
    %134 = tpu.concatenate %132, %133 in 1 : vector<16x8xf32>, vector<16x8xf32> -> vector<16x16xf32>
    %135 = arith.mulf %131, %3 : vector<16x16xf32>
    %136 = arith.mulf %134, %4 : vector<16x16xf32>
    %137 = arith.addf %135, %136 : vector<16x16xf32>
    %138 = arith.truncf %137 : vector<16x16xf32> to vector<16x16xbf16>
    %cst_38 = arith.constant dense<0.000000e+00> : vector<16x16xf32>
    %139 = tpu.matmul %138, %36, %cst_38 {dimension_numbers = #tpu.dot_dimension_numbers<[1], [1], [0], [0], [0, 0, 1, 0], [], []>} : vector<16x16xbf16>, vector<16x16xbf16>, vector<16x16xf32> -> vector<16x16xf32>
    %cst_39 = arith.constant 2.500000e-01 : f32
    %140 = vector.broadcast %cst_39 : f32 to vector<16x16xf32>
    %141 = arith.mulf %139, %140 : vector<16x16xf32>
    %cst_40 = arith.constant -1.000000e+30 : f32
    %142 = vector.broadcast %cst_40 : f32 to vector<16x16xf32>
    %143 = arith.select %43, %141, %142 : vector<16x16xi1>, vector<16x16xf32>
    %cst_41 = arith.constant dense<0xFF800000> : vector<16xf32>
    %144 = vector.multi_reduction <maximumf>, %143, %cst_41 [1] : vector<16x16xf32> to vector<16xf32>
    %145 = vector.shape_cast %144 : vector<16xf32> to vector<16x1xf32>
    %146 = vector.broadcast %145 : vector<16x1xf32> to vector<16x16xf32>
    %147 = arith.subf %143, %146 : vector<16x16xf32>
    %148 = math.exp %147 : vector<16x16xf32>
    %cst_42 = arith.constant dense<0.000000e+00> : vector<16xf32>
    %149 = vector.multi_reduction <add>, %148, %cst_42 [1] : vector<16x16xf32> to vector<16xf32>
    %150 = vector.shape_cast %149 : vector<16xf32> to vector<16x1xf32>
    %151 = tpu.reciprocal %150 {approx = true} : vector<16x1xf32> -> vector<16x1xf32>
    %152 = vector.broadcast %151 : vector<16x1xf32> to vector<16x16xf32>
    %153 = arith.mulf %148, %152 : vector<16x16xf32>
    %154 = arith.truncf %153 : vector<16x16xf32> to vector<16x16xbf16>
    %cst_43 = arith.constant dense<0.000000e+00> : vector<16x16xf32>
    %155 = tpu.matmul %154, %40, %cst_43 {dimension_numbers = #tpu.dot_dimension_numbers<[1], [0], [0], [1], [0, 0, 1, 1], [], []>} : vector<16x16xbf16>, vector<16x16xbf16>, vector<16x16xf32> -> vector<16x16xf32>
    %156 = arith.truncf %155 : vector<16x16xf32> to vector<16x16xbf16>
    %c48 = arith.constant 48 : index
    %c0_44 = arith.constant 0 : index
    %157 = vector.load %arg4[%c48, %c0_44] : memref<64x64xbf16, #tpu.memory_space<vmem>>, vector<16x64xbf16>
    %cst_45 = arith.constant dense<0.000000e+00> : vector<16x64xf32>
    %158 = tpu.matmul %156, %157, %cst_45 {dimension_numbers = #tpu.dot_dimension_numbers<[1], [0], [0], [1], [0, 0, 1, 1], [], []>} : vector<16x16xbf16>, vector<16x64xbf16>, vector<16x64xf32> -> vector<16x64xf32>
    %159 = arith.addf %130, %158 : vector<16x64xf32>
    %160 = arith.truncf %159 : vector<16x64xf32> to vector<16x64xbf16>
    %c0_46 = arith.constant 0 : index
    %c0_47 = arith.constant 0 : index
    %c0_48 = arith.constant 0 : index
    %161 = vector.load %arg7[%c0_46, %c0_47, %c0_48] : memref<1x16x64xbf16, #tpu.memory_space<vmem>>, vector<1x16x64xbf16>
    %162 = vector.shape_cast %161 : vector<1x16x64xbf16> to vector<16x64xbf16>
    %163 = vector.shape_cast %160 : vector<16x64xbf16> to vector<1x16x64xbf16>
    tpu.vector_store %arg7[%c0_46, %c0_47, %c0_48], %163 {strides = array<i32>} : memref<1x16x64xbf16, #tpu.memory_space<vmem>>, vector<1x16x64xbf16>,
    return
  }
  func.func @transform_0(%arg0: i32) -> (i32, i32, i32) {
    %c0_i32 = arith.constant 0 : i32
    %c0_i32_0 = arith.constant 0 : i32
    %c0_i32_1 = arith.constant 0 : i32
    return %arg0, %c0_i32, %c0_i32_0 : i32, i32, i32
  }
  func.func @transform_1(%arg0: i32) -> (i32, i32) {
    %c0_i32 = arith.constant 0 : i32
    %c0_i32_0 = arith.constant 0 : i32
    %c0_i32_1 = arith.constant 0 : i32
    return %c0_i32, %c0_i32_0 : i32, i32
  }
  func.func @transform_2(%arg0: i32) -> (i32, i32) {
    %c0_i32 = arith.constant 0 : i32
    %c0_i32_0 = arith.constant 0 : i32
    %c0_i32_1 = arith.constant 0 : i32
    return %c0_i32, %c0_i32_0 : i32, i32
  }
  func.func @transform_3(%arg0: i32) -> (i32, i32) {
    %c0_i32 = arith.constant 0 : i32
    %c0_i32_0 = arith.constant 0 : i32
    %c0_i32_1 = arith.constant 0 : i32
    return %c0_i32, %c0_i32_0 : i32, i32
  }
  func.func @transform_4(%arg0: i32) -> (i32, i32) {
    %c0_i32 = arith.constant 0 : i32
    %c0_i32_0 = arith.constant 0 : i32
    %c0_i32_1 = arith.constant 0 : i32
    return %c0_i32, %c0_i32_0 : i32, i32
  }
  func.func @transform_5(%arg0: i32) -> (i32, i32) {
    %c0_i32 = arith.constant 0 : i32
    %c0_i32_0 = arith.constant 0 : i32
    %c0_i32_1 = arith.constant 0 : i32
    return %c0_i32, %c0_i32_0 : i32, i32
  }
  func.func @transform_6(%arg0: i32) -> (i32, i32, i32) {
    %c0_i32 = arith.constant 0 : i32
    %c0_i32_0 = arith.constant 0 : i32
    %c0_i32_1 = arith.constant 0 : i32
    return %arg0, %c0_i32, %c0_i32_0 : i32, i32, i32
  }
}

module attributes {stable_mosaic.version = 11 : i64} {
  func.func @_mlp_kernel(%arg0: i32, %arg1: memref<16x64xbf16, #tpu.memory_space<vmem>>, %arg2: memref<1x64xf32, #tpu.memory_space<vmem>>, %arg3: memref<64x384xbf16, #tpu.memory_space<vmem>>, %arg4: memref<192x64xbf16, #tpu.memory_space<vmem>>, %arg5: memref<16x64xbf16, #tpu.memory_space<vmem>>) attributes {dimension_semantics = [#tpu.dimension_semantics<parallel>], iteration_bounds = array<i64: 2>, scalar_prefetch = 0 : i64, scratch_operands = 0 : i64, tpu.core_type = #tpu.core_type<tc>, window_params = [{transform_indices = @transform_0, window_bounds = array<i64: 16, 64>}, {pipeline_mode = #tpu.pipeline_mode<synchronous>, transform_indices = @transform_1, window_bounds = array<i64: 1, 64>}, {pipeline_mode = #tpu.pipeline_mode<synchronous>, transform_indices = @transform_2, window_bounds = array<i64: 64, 384>}, {pipeline_mode = #tpu.pipeline_mode<synchronous>, transform_indices = @transform_3, window_bounds = array<i64: 192, 64>}, {transform_indices = @transform_4, window_bounds = array<i64: 16, 64>}]} {
    %c0 = arith.constant 0 : index
    %c0_0 = arith.constant 0 : index
    %0 = vector.load %arg1[%c0, %c0_0] : memref<16x64xbf16, #tpu.memory_space<vmem>>, vector<16x64xbf16>
    %1 = arith.extf %0 : vector<16x64xbf16> to vector<16x64xf32>
    %c0_1 = arith.constant 0 : index
    %c0_2 = arith.constant 0 : index
    %2 = vector.load %arg2[%c0_1, %c0_2] : memref<1x64xf32, #tpu.memory_space<vmem>>, vector<1x64xf32>
    %3 = arith.mulf %1, %1 : vector<16x64xf32>
    %cst = arith.constant dense<0.000000e+00> : vector<16xf32>
    %4 = vector.multi_reduction <add>, %3, %cst [1] : vector<16x64xf32> to vector<16xf32>
    %5 = vector.shape_cast %4 : vector<16xf32> to vector<16x1xf32>
    %cst_3 = arith.constant 6.400000e+01 : f32
    %6 = vector.broadcast %cst_3 : f32 to vector<16x1xf32>
    %7 = arith.divf %5, %6 : vector<16x1xf32>
    %cst_4 = arith.constant 9.99999997E-7 : f32
    %8 = vector.broadcast %cst_4 : f32 to vector<16x1xf32>
    %9 = arith.addf %7, %8 : vector<16x1xf32>
    %10 = math.rsqrt %9 : vector<16x1xf32>
    %11 = vector.broadcast %10 : vector<16x1xf32> to vector<16x64xf32>
    %12 = arith.mulf %1, %11 : vector<16x64xf32>
    %13 = vector.broadcast %2 : vector<1x64xf32> to vector<16x64xf32>
    %14 = arith.mulf %12, %13 : vector<16x64xf32>
    %15 = arith.truncf %14 : vector<16x64xf32> to vector<16x64xbf16>
    %c0_5 = arith.constant 0 : index
    %c0_6 = arith.constant 0 : index
    %16 = vector.load %arg3[%c0_5, %c0_6] : memref<64x384xbf16, #tpu.memory_space<vmem>>, vector<64x384xbf16>
    %cst_7 = arith.constant dense<0.000000e+00> : vector<16x384xf32>
    %17 = tpu.matmul %15, %16, %cst_7 {dimension_numbers = #tpu.dot_dimension_numbers<[1], [0], [0], [1], [0, 0, 1, 1], [], []>} : vector<16x64xbf16>, vector<64x384xbf16>, vector<16x384xf32> -> vector<16x384xf32>
    %18 = vector.extract_strided_slice %17 {offsets = [0, 0], sizes = [16, 192], strides = [1, 1]} : vector<16x384xf32> to vector<16x192xf32>
    %19 = vector.extract_strided_slice %17 {offsets = [0, 192], sizes = [16, 192], strides = [1, 1]} : vector<16x384xf32> to vector<16x192xf32>
    %20 = arith.negf %18 : vector<16x192xf32>
    %21 = math.exp %20 : vector<16x192xf32>
    %cst_8 = arith.constant 1.000000e+00 : f32
    %22 = vector.broadcast %cst_8 : f32 to vector<16x192xf32>
    %23 = arith.addf %22, %21 : vector<16x192xf32>
    %24 = arith.divf %22, %23 : vector<16x192xf32>
    %25 = arith.mulf %24, %18 : vector<16x192xf32>
    %26 = arith.mulf %25, %19 : vector<16x192xf32>
    %27 = arith.truncf %26 : vector<16x192xf32> to vector<16x192xbf16>
    %c0_9 = arith.constant 0 : index
    %c0_10 = arith.constant 0 : index
    %28 = vector.load %arg4[%c0_9, %c0_10] : memref<192x64xbf16, #tpu.memory_space<vmem>>, vector<192x64xbf16>
    %cst_11 = arith.constant dense<0.000000e+00> : vector<16x64xf32>
    %29 = tpu.matmul %27, %28, %cst_11 {dimension_numbers = #tpu.dot_dimension_numbers<[1], [0], [0], [1], [0, 0, 1, 1], [], []>} : vector<16x192xbf16>, vector<192x64xbf16>, vector<16x64xf32> -> vector<16x64xf32>
    %30 = arith.addf %1, %29 : vector<16x64xf32>
    %31 = arith.truncf %30 : vector<16x64xf32> to vector<16x64xbf16>
    %c0_12 = arith.constant 0 : index
    %c0_13 = arith.constant 0 : index
    %32 = vector.load %arg5[%c0_12, %c0_13] : memref<16x64xbf16, #tpu.memory_space<vmem>>, vector<16x64xbf16>
    tpu.vector_store %arg5[%c0_12, %c0_13], %31 {strides = array<i32>} : memref<16x64xbf16, #tpu.memory_space<vmem>>, vector<16x64xbf16>,
    return
  }
  func.func @transform_0(%arg0: i32) -> (i32, i32) {
    %c0_i32 = arith.constant 0 : i32
    %c0_i32_0 = arith.constant 0 : i32
    return %arg0, %c0_i32 : i32, i32
  }
  func.func @transform_1(%arg0: i32) -> (i32, i32) {
    %c0_i32 = arith.constant 0 : i32
    %c0_i32_0 = arith.constant 0 : i32
    %c0_i32_1 = arith.constant 0 : i32
    return %c0_i32, %c0_i32_0 : i32, i32
  }
  func.func @transform_2(%arg0: i32) -> (i32, i32) {
    %c0_i32 = arith.constant 0 : i32
    %c0_i32_0 = arith.constant 0 : i32
    %c0_i32_1 = arith.constant 0 : i32
    return %c0_i32, %c0_i32_0 : i32, i32
  }
  func.func @transform_3(%arg0: i32) -> (i32, i32) {
    %c0_i32 = arith.constant 0 : i32
    %c0_i32_0 = arith.constant 0 : i32
    %c0_i32_1 = arith.constant 0 : i32
    return %c0_i32, %c0_i32_0 : i32, i32
  }
  func.func @transform_4(%arg0: i32) -> (i32, i32) {
    %c0_i32 = arith.constant 0 : i32
    %c0_i32_0 = arith.constant 0 : i32
    return %arg0, %c0_i32 : i32, i32
  }
}

module attributes {stable_mosaic.version = 11 : i64} {
  func.func @_head_kernel(%arg0: i32, %arg1: memref<16x64xbf16, #tpu.memory_space<vmem>>, %arg2: memref<1x64xf32, #tpu.memory_space<vmem>>, %arg3: memref<512x64xbf16, #tpu.memory_space<vmem>>, %arg4: memref<16x1xi32, #tpu.memory_space<vmem>>, %arg5: memref<16x512xf32, #tpu.memory_space<vmem>>, %arg6: memref<1x1x128xf32, #tpu.memory_space<vmem>>, %arg7: memref<1x1x128xf32, #tpu.memory_space<vmem>>) attributes {dimension_semantics = [#tpu.dimension_semantics<parallel>], iteration_bounds = array<i64: 2>, scalar_prefetch = 0 : i64, scratch_operands = 0 : i64, tpu.core_type = #tpu.core_type<tc>, window_params = [{transform_indices = @transform_0, window_bounds = array<i64: 16, 64>}, {pipeline_mode = #tpu.pipeline_mode<synchronous>, transform_indices = @transform_1, window_bounds = array<i64: 1, 64>}, {pipeline_mode = #tpu.pipeline_mode<synchronous>, transform_indices = @transform_2, window_bounds = array<i64: 512, 64>}, {transform_indices = @transform_3, window_bounds = array<i64: 16, 1>}, {transform_indices = @transform_4, window_bounds = array<i64: 16, 512>}, {transform_indices = @transform_5, window_bounds = array<i64: 1, 1, 128>}, {transform_indices = @transform_6, window_bounds = array<i64: 1, 1, 128>}]} {
    %c0 = arith.constant 0 : index
    %c0_0 = arith.constant 0 : index
    %0 = vector.load %arg1[%c0, %c0_0] : memref<16x64xbf16, #tpu.memory_space<vmem>>, vector<16x64xbf16>
    %1 = arith.extf %0 : vector<16x64xbf16> to vector<16x64xf32>
    %c0_1 = arith.constant 0 : index
    %c0_2 = arith.constant 0 : index
    %2 = vector.load %arg2[%c0_1, %c0_2] : memref<1x64xf32, #tpu.memory_space<vmem>>, vector<1x64xf32>
    %3 = arith.mulf %1, %1 : vector<16x64xf32>
    %cst = arith.constant dense<0.000000e+00> : vector<16xf32>
    %4 = vector.multi_reduction <add>, %3, %cst [1] : vector<16x64xf32> to vector<16xf32>
    %5 = vector.shape_cast %4 : vector<16xf32> to vector<16x1xf32>
    %cst_3 = arith.constant 6.400000e+01 : f32
    %6 = vector.broadcast %cst_3 : f32 to vector<16x1xf32>
    %7 = arith.divf %5, %6 : vector<16x1xf32>
    %cst_4 = arith.constant 9.99999997E-7 : f32
    %8 = vector.broadcast %cst_4 : f32 to vector<16x1xf32>
    %9 = arith.addf %7, %8 : vector<16x1xf32>
    %10 = math.rsqrt %9 : vector<16x1xf32>
    %11 = vector.broadcast %10 : vector<16x1xf32> to vector<16x64xf32>
    %12 = arith.mulf %1, %11 : vector<16x64xf32>
    %13 = vector.broadcast %2 : vector<1x64xf32> to vector<16x64xf32>
    %14 = arith.mulf %12, %13 : vector<16x64xf32>
    %15 = arith.truncf %14 : vector<16x64xf32> to vector<16x64xbf16>
    %c0_5 = arith.constant 0 : index
    %c0_6 = arith.constant 0 : index
    %16 = vector.load %arg3[%c0_5, %c0_6] : memref<512x64xbf16, #tpu.memory_space<vmem>>, vector<512x64xbf16>
    %cst_7 = arith.constant dense<0.000000e+00> : vector<16x512xf32>
    %17 = tpu.matmul %15, %16, %cst_7 {dimension_numbers = #tpu.dot_dimension_numbers<[1], [1], [0], [0], [0, 0, 1, 0], [], []>} : vector<16x64xbf16>, vector<512x64xbf16>, vector<16x512xf32> -> vector<16x512xf32>
    %c0_8 = arith.constant 0 : index
    %c0_9 = arith.constant 0 : index
    %18 = vector.load %arg5[%c0_8, %c0_9] : memref<16x512xf32, #tpu.memory_space<vmem>>, vector<16x512xf32>
    tpu.vector_store %arg5[%c0_8, %c0_9], %17 {strides = array<i32>} : memref<16x512xf32, #tpu.memory_space<vmem>>, vector<16x512xf32>,
    %c0_10 = arith.constant 0 : index
    %c0_11 = arith.constant 0 : index
    %19 = vector.load %arg4[%c0_10, %c0_11] : memref<16x1xi32, #tpu.memory_space<vmem>>, vector<16x1xi32>
    %cst_12 = arith.constant dense<0xFF800000> : vector<16xf32>
    %20 = vector.multi_reduction <maximumf>, %17, %cst_12 [1] : vector<16x512xf32> to vector<16xf32>
    %21 = vector.shape_cast %20 : vector<16xf32> to vector<16x1xf32>
    %22 = vector.broadcast %21 : vector<16x1xf32> to vector<16x512xf32>
    %23 = arith.subf %17, %22 : vector<16x512xf32>
    %24 = math.exp %23 : vector<16x512xf32>
    %cst_13 = arith.constant dense<0.000000e+00> : vector<16xf32>
    %25 = vector.multi_reduction <add>, %24, %cst_13 [1] : vector<16x512xf32> to vector<16xf32>
    %26 = vector.shape_cast %25 : vector<16xf32> to vector<16x1xf32>
    %27 = math.log %26 : vector<16x1xf32>
    %28 = arith.addf %27, %21 : vector<16x1xf32>
    %29 = tpu.iota {dimensions = array<i32: 1>} : vector<16x512xi32>
    %30 = vector.broadcast %19 : vector<16x1xi32> to vector<16x512xi32>
    %31 = arith.cmpi eq, %29, %30 : vector<16x512xi32>
    %32 = arith.extui %31 : vector<16x512xi1> to vector<16x512xi32>
    %33 = arith.sitofp %32 : vector<16x512xi32> to vector<16x512xf32>
    %34 = arith.mulf %33, %17 : vector<16x512xf32>
    %cst_14 = arith.constant dense<0.000000e+00> : vector<16xf32>
    %35 = vector.multi_reduction <add>, %34, %cst_14 [1] : vector<16x512xf32> to vector<16xf32>
    %36 = vector.shape_cast %35 : vector<16xf32> to vector<16x1xf32>
    %c-1_i32 = arith.constant -1 : i32
    %37 = vector.broadcast %c-1_i32 : i32 to vector<16x1xi32>
    %38 = arith.cmpi ne, %19, %37 : vector<16x1xi32>
    %39 = arith.extui %38 : vector<16x1xi1> to vector<16x1xi32>
    %40 = arith.sitofp %39 : vector<16x1xi32> to vector<16x1xf32>
    %41 = arith.subf %28, %36 : vector<16x1xf32>
    %42 = arith.mulf %41, %40 : vector<16x1xf32>
    %43 = tpu.iota {dimensions = array<i32: 2>} : vector<1x1x128xi32>
    %c0_i32 = arith.constant 0 : i32
    %44 = vector.broadcast %c0_i32 : i32 to vector<1x1x128xi32>
    %45 = arith.cmpi eq, %43, %44 : vector<1x1x128xi32>
    %46 = vector.shape_cast %42 : vector<16x1xf32> to vector<1x16x1xf32>
    %cst_15 = arith.constant dense<0.000000e+00> : vector<1xf32>
    %47 = vector.multi_reduction <add>, %46, %cst_15 [1, 2] : vector<1x16x1xf32> to vector<1xf32>
    %48 = vector.shape_cast %47 : vector<1xf32> to vector<1x1x1xf32>
    %49 = vector.extract %48[0, 0, 0] : f32 from vector<1x1x1xf32>
    %cst_16 = arith.constant 0.000000e+00 : f32
    %50 = vector.broadcast %49 : f32 to vector<1x1x128xf32>
    %51 = vector.broadcast %cst_16 : f32 to vector<1x1x128xf32>
    %52 = arith.select %45, %50, %51 : vector<1x1x128xi1>, vector<1x1x128xf32>
    %c0_17 = arith.constant 0 : index
    %c0_18 = arith.constant 0 : index
    %c0_19 = arith.constant 0 : index
    %53 = vector.load %arg6[%c0_17, %c0_18, %c0_19] : memref<1x1x128xf32, #tpu.memory_space<vmem>>, vector<1x1x128xf32>
    tpu.vector_store %arg6[%c0_17, %c0_18, %c0_19], %52 {strides = array<i32>} : memref<1x1x128xf32, #tpu.memory_space<vmem>>, vector<1x1x128xf32>,
    %c0_i32_20 = arith.constant 0 : i32
    %54 = vector.broadcast %c0_i32_20 : i32 to vector<1x1x128xi32>
    %55 = arith.cmpi eq, %43, %54 : vector<1x1x128xi32>
    %56 = vector.shape_cast %40 : vector<16x1xf32> to vector<1x16x1xf32>
    %cst_21 = arith.constant dense<0.000000e+00> : vector<1xf32>
    %57 = vector.multi_reduction <add>, %56, %cst_21 [1, 2] : vector<1x16x1xf32> to vector<1xf32>
    %58 = vector.shape_cast %57 : vector<1xf32> to vector<1x1x1xf32>
    %59 = vector.extract %58[0, 0, 0] : f32 from vector<1x1x1xf32>
    %cst_22 = arith.constant 0.000000e+00 : f32
    %60 = vector.broadcast %59 : f32 to vector<1x1x128xf32>
    %61 = vector.broadcast %cst_22 : f32 to vector<1x1x128xf32>
    %62 = arith.select %55, %60, %61 : vector<1x1x128xi1>, vector<1x1x128xf32>
    %c0_23 = arith.constant 0 : index
    %c0_24 = arith.constant 0 : index
    %c0_25 = arith.constant 0 : index
    %63 = vector.load %arg7[%c0_23, %c0_24, %c0_25] : memref<1x1x128xf32, #tpu.memory_space<vmem>>, vector<1x1x128xf32>
    tpu.vector_store %arg7[%c0_23, %c0_24, %c0_25], %62 {strides = array<i32>} : memref<1x1x128xf32, #tpu.memory_space<vmem>>, vector<1x1x128xf32>,
    return
  }
  func.func @transform_0(%arg0: i32) -> (i32, i32) {
    %c0_i32 = arith.constant 0 : i32
    %c0_i32_0 = arith.constant 0 : i32
    return %arg0, %c0_i32 : i32, i32
  }
  func.func @transform_1(%arg0: i32) -> (i32, i32) {
    %c0_i32 = arith.constant 0 : i32
    %c0_i32_0 = arith.constant 0 : i32
    %c0_i32_1 = arith.constant 0 : i32
    return %c0_i32, %c0_i32_0 : i32, i32
  }
  func.func @transform_2(%arg0: i32) -> (i32, i32) {
    %c0_i32 = arith.constant 0 : i32
    %c0_i32_0 = arith.constant 0 : i32
    %c0_i32_1 = arith.constant 0 : i32
    return %c0_i32, %c0_i32_0 : i32, i32
  }
  func.func @transform_3(%arg0: i32) -> (i32, i32) {
    %c0_i32 = arith.constant 0 : i32
    %c0_i32_0 = arith.constant 0 : i32
    return %arg0, %c0_i32 : i32, i32
  }
  func.func @transform_4(%arg0: i32) -> (i32, i32) {
    %c0_i32 = arith.constant 0 : i32
    %c0_i32_0 = arith.constant 0 : i32
    return %arg0, %c0_i32 : i32, i32
  }
  func.func @transform_5(%arg0: i32) -> (i32, i32, i32) {
    %c0_i32 = arith.constant 0 : i32
    %c0_i32_0 = arith.constant 0 : i32
    %c0_i32_1 = arith.constant 0 : i32
    return %arg0, %c0_i32, %c0_i32_0 : i32, i32, i32
  }
  func.func @transform_6(%arg0: i32) -> (i32, i32, i32) {
    %c0_i32 = arith.constant 0 : i32
    %c0_i32_0 = arith.constant 0 : i32
    %c0_i32_1 = arith.constant 0 : i32
    return %arg0, %c0_i32, %c0_i32_0 : i32, i32, i32
  }
}

</mosaic_0001>

<bundles_post_ra>
// kernel: myllama_forward.6
= control target key start
LH: loop header
LB: loop body
LE: loop exit
PB: predicated region body
PF: predicated region fallthrough
CT: control target
= control target key end

     0   :  { %s827_s15 = smov 0   ;;  %s958_s0 = inlined_call_operand.vmem [shape: bf16[32,64], index: 0, kind: input, shape index: {}, may-alias: {0,4}]   ;;  %s959_s1 = inlined_call_operand.vmem [shape: f32[1,64], index: 1, kind: input, shape index: {}]   ;;  %s960_s2 = inlined_call_operand.vmem [shape: bf16[64,384], index: 2, kind: input, shape index: {}]   ;;  %s961_s3 = inlined_call_operand.vmem [shape: bf16[192,64], index: 3, kind: input, shape index: {}]   ;;  %s962_s4 = inlined_call_operand.vmem [shape: bf16[32,64], index: 4, kind: output, shape index: {}, may-alias: {0,4}]  }
   0x1 LB: > { %s662_s16 = sadd.s32 4294967295, %s796_s15   ;;  %p666_p0 = scmp.ge.s32.totalorder %s796_s15, 1  ;;  %s796_s15 = sphi %s827_s15, %s14_s15  }
   0x2   : > { %p163_p1 = scmp.lt.s32.totalorder %s796_s15, 3 }
   0x4   : > { %p164_p2 = pnand %p666_p0, %p163_p1 }
   0x5   : > { %s667_s17 = sshll.u32 (!%p164_p2), %s662_s16, 1  ;;  %vm209_vm0 = vcmask (!%p164_p2), 523264   ;;  %v742_v7 = vld [vmem:[%s960_s2 + $0x4] ss:$12 sps:$4 sm:$0xff] (!%p164_p2)   ;;  %v744_v8 = vld [vmem:[%s960_s2] ss:$12 sps:$4 sm:$0xff] (!%p164_p2)  }
   0x6   : > { %167 = sbr.rel (%p164_p2) target bundleno = 760 (0x2f8), region = 36  ;;  %p190_p3 = scmp.lt.s32.totalorder (!%p164_p2), %s667_s17, 3  ;;  %317 = vmatprep.subr.bf16.mxu1 (!%p164_p2), %v742_v7  ;;  %v745_v9 = vld [vmem:[%s960_s2 + $0x1c] ss:$12 sps:$4 sm:$0xff] (!%p164_p2)   ;;  %v747_v10 = vld [vmem:[%s960_s2 + $0x18] ss:$12 sps:$4 sm:$0xff] (!%p164_p2)  }
   0x7   : > { %318 = vmatpush1.bf16.msra.mxu1 (!%p164_p2), %v744_v8  ;;  %v748_v11 = vld [vmem:[%s960_s2 + $0x34] ss:$12 sps:$4 sm:$0xff] (!%p164_p2)   ;;  %v798_v12 = vmov (!%p164_p2), 0   ;;  %v750_v13 = vld [vmem:[%s960_s2 + $0x30] ss:$12 sps:$4 sm:$0xff] (!%p164_p2)   ;;  %v799_v16 = vmov (!%p164_p2), 0.0  }
   0x8   : > { %319 = vmatprep.subr.bf16.mxu1 (!%p164_p2), %v745_v9  ;;  %349 = vmatprep.mubr.bf16.mxu1 (!%p164_p2), %v798_v12  ;;  %v751_v14 = vld [vmem:[%s960_s2 + $0x4c] ss:$12 sps:$4 sm:$0xff] (!%p164_p2)   ;;  %v753_v15 = vld [vmem:[%s960_s2 + $0x48] ss:$12 sps:$4 sm:$0xff] (!%p164_p2)   ;;  %v671_v26 = vld [vmem:[%s959_s1] ss:$0 sm:$0xff] (!%p164_p2) }
   0x9   : > { %552 = vmatprep.subr.bf16.mxu0 (!%p164_p2), %v798_v12  ;;  %v754_v30 = vld [vmem:[%s960_s2 + $0x8] ss:$12 sps:$4 sm:$0xff] (!%p164_p2)   ;;  %v755_v32 = vld [vmem:[%s960_s2 + $0x20] ss:$12 sps:$4 sm:$0xff] (!%p164_p2)   ;;  %vm800_vm1 = vmmov (!%p164_p2), 0   ;;  %v761_v38 = vld [vmem:[%s961_s3 + $0x18] sm:$0xff] (!%p164_p2)  }
   0xa   : > { %v756_v33 = vld [vmem:[%s960_s2 + $0x38] ss:$12 sps:$4 sm:$0xff] (!%p164_p2)   ;;  %v757_v34 = vld [vmem:[%s960_s2 + $0x50] ss:$12 sps:$4 sm:$0xff] (!%p164_p2)   ;;  %v759_v36 = vld [vmem:[%s961_s3 + $0x8] sm:$0xff] (!%p164_p2)   ;;  %s801_s22 = smov (!%p164_p2), 64  }
   0xb   : > { %320 = vmatpush1.bf16.msra.mxu1 (!%p164_p2), %v747_v10  ;;  %v758_v35 = vld [vmem:[%s961_s3] sm:$0xff] (!%p164_p2)   ;;  %v760_v37 = vld [vmem:[%s961_s3 + $0x10] sm:$0xff] (!%p164_p2)   ;;  %v763_v40 = vld [vmem:[%s961_s3 + $0x28] sm:$0xff] (!%p164_p2)   ;;  %vm603_vm2 = vcmask (!%p164_p2), 519168  }
   0xc   : > { %321 = vmatprep.subr.bf16.mxu1 (!%p164_p2), %v748_v11  ;;  %553 = vmatpush1.bf16.msra.mxu0 (!%p164_p2), %v758_v35  ;;  %v762_v39 = vld [vmem:[%s961_s3 + $0x20] sm:$0xff] (!%p164_p2)   ;;  %v764_v41 = vld [vmem:[%s961_s3 + $0x30] sm:$0xff] (!%p164_p2)   ;;  %v765_v42 = vld [vmem:[%s961_s3 + $0x38] sm:$0xff] (!%p164_p2)  }
   0xd   : > { %s964_s17 = smov (!%p190_p3, %s667_s17), 3  ;;  %554 = vmatprep.subr.bf16.mxu0 %v798_v12  ;;  %v766_v43 = vld [vmem:[%s961_s3 + $0x40] sm:$0xff]   ;;  %v767_v44 = vld [vmem:[%s961_s3 + $0x48] sm:$0xff]   ;;  %v768_v49 = vld [vmem:[%s961_s3 + $0x50] sm:$0xff]  }
   0xe   : > { %s668_s18 = sshll.u32 %s964_s17, 2  ;;  %v769_v50 = vld [vmem:[%s961_s3 + $0x58] sm:$0xff]  }
   0xf   : > { %s193_s21 = scalar_lea.vmem %s958_s0, %s668_s18  ;;  %322 = vmatpush1.bf16.msra.mxu1 %v750_v13  ;;  %s199_s29 = scalar_lea.vmem %s962_s4, %s668_s18 }
  0x10   : > { %v710_v0 = vld [vmem:[%s193_s21] sm:$0xff]   ;;  %323 = vmatprep.subr.bf16.mxu1 %v751_v14  ;;  %555 = vmatpush1.bf16.msra.mxu0 %v759_v36 }
  0x11   : > { %v843_v1 = vunpack.c.l.bf16 %v710_v0  ;;  %v845_v2 = vunpack.c.h.bf16 %v710_v0  ;;  %556 = vmatprep.subr.bf16.mxu0 %v798_v12 }
  0x13   : > { %v207_v3 = vmul.f32 %v843_v1, %v843_v1  ;;  %v208_v4 = vmul.f32 %v845_v2, %v845_v2  ;;  %324 = vmatpush1.bf16.msra.mxu1 %v753_v15 }
  0x14   : > { %718 = vmatprep.subr.bf16.mxu1 %v799_v16  ;;  %557 = vmatpush1.bf16.msra.mxu0 %v760_v37 }
  0x15   : > { %v210_v5 = vsel %vm209_vm0, %v207_v3, 0.0  ;;  %v213_v6 = vsel %vm209_vm0, %v208_v4, 0.0  ;;  %558 = vmatprep.subr.bf16.mxu0 %v798_v12 }
  0x16   : > { %211 = vadd.xlane.f32.xlu0 %v210_v5 }
  0x18   : > { %559 = vmatpush1.bf16.msra.mxu0 %v761_v38 }
  0x19   : > { %560 = vmatprep.subr.bf16.mxu0 %v798_v12 }
  0x1a   : > { %214 = vadd.xlane.f32.xlu0 %v213_v6 }
  0x1c   : > { %561 = vmatpush1.bf16.msra.mxu0 %v762_v39 }
  0x1d   : > { %562 = vmatprep.subr.bf16.mxu0 %v798_v12 }
  0x20   : > { %563 = vmatpush1.bf16.msra.mxu0 %v763_v40 }
  0x21   : > { %564 = vmatprep.subr.bf16.mxu0 %v798_v12 }
  0x24   : > { %565 = vmatpush1.bf16.msra.mxu0 %v764_v41 }
  0x25   : > { %566 = vmatprep.subr.bf16.mxu0 %v798_v12 }
  0x28   : > { %567 = vmatpush1.bf16.msra.mxu0 %v765_v42 }
  0x29   : > { %568 = vmatprep.subr.bf16.mxu0 %v798_v12 }
  0x2c   : > { %569 = vmatpush1.bf16.msra.mxu0 %v766_v43 }
  0x2d   : > { %570 = vmatprep.subr.bf16.mxu0 %v798_v12 }
  0x30   : > { %571 = vmatpush1.bf16.msra.mxu0 %v767_v44 }
  0x31   : > { %572 = vmatprep.subr.bf16.mxu0 %v798_v12 }
  0x34   : > { %573 = vmatpush1.bf16.msra.mxu0 %v768_v49 }
  0x35   : > { %574 = vmatprep.subr.bf16.mxu0 %v798_v12 }
  0x38   : > { %575 = vmatpush1.bf16.msra.mxu0 %v769_v50 }
  0xa3   : > { %v212_v17 = vpop.xlane.xlu0 %211 }
  0xa4   : > { %v217_v18 = vmul.f32 0.015625, %v212_v17 }
  0xa6   : > { %v219_v19 = vadd.f32 1e-06, %v217_v18 }
  0xa7   : > { %v215_v20 = vpop.xlane.xlu0 %214 }
  0xa8   : > { %770 = vrsqrt.f32 %v219_v19  ;;  %v218_v21 = vmul.f32 0.015625, %v215_v20 }
  0xaa   : > { %v220_v22 = vadd.f32 1e-06, %v218_v21 }
  0xac   : > { %772 = vrsqrt.f32 %v220_v22 }
  0xb2   : > { %v771_v23 = vpop.eup %770 }
  0xb3   : > { %v223_v24 = vmul.f32 %v771_v23, %v843_v1 }
  0xb5   : > { %v231_v28 = vmul.f32 %v671_v26, %v223_v24 }
  0xb6   : > { %v773_v25 = vpop.eup %772 }
  0xb7   : > { %v224_v27 = vmul.f32 %v773_v25, %v845_v2 }
  0xb9   : > { %v232_v29 = vmul.f32 %v671_v26, %v224_v27 }
  0xbb   : > { %v233_v31 = vpack.c.bf16 %v232_v29, %v231_v28 }
  0xbd   : > { %684 = vmatmul.mubr.msk.bf16.vlgmr.msra.gmra.mrb[0].mxu1 %vm209_vm0, %v233_v31 }
  0xbe   : > { %719 = vmatpush3.bf16.msra.mxu1 %v754_v30  ;;  %726 = vmatprep.mubr.msk.bf16.mxu1 %vm800_vm1, %v799_v16 }
  0xbf   : > { %720 = vmatprep.subr.bf16.mxu1 %v799_v16 }
  0xc2   : > { %721 = vmatpush3.bf16.msra.mxu1 %v755_v32 }
  0xc3   : > { %722 = vmatprep.subr.bf16.mxu1 %v799_v16 }
  0xc6   : > { %723 = vmatpush3.bf16.msra.mxu1 %v756_v33 }
  0xc7   : > { %724 = vmatprep.subr.bf16.mxu1 %v799_v16 }
  0xca   : > { %725 = vmatpush3.bf16.msra.mxu1 %v757_v34 }
  0xcd   : > { %727 = vmatmul.mubr.msk.bf16.vlgmr.msra.gmra.mrb[4].mxu1 %vm209_vm0, %v233_v31 }
 0x190   : > { %v351_v45 = vpop.f32.mrb[0].mxu1 }
 0x191   : > { %v353_v46 = vpop.f32.mrb[1].mxu1  ;;  %v686_v55 = vmul.f32 -1.442695, %v351_v45 }
 0x192   : > { %433 = vrot.lane.b32.xlu1 %v353_v46, %s801_s22  ;;  %v355_v47 = vpop.f32.mrb[2].mxu1  ;;  %v687_v56 = vmul.f32 -1.442695, %v353_v46 }
 0x193   : > { %v357_v48 = vpop.f32.mrb[3].mxu1  ;;  %v688_v58 = vmul.f32 -1.442695, %v355_v47  ;;  %774 = vpow2.f32 %v686_v55 }
 0x194   : > { %437 = vrot.lane.b32.xlu0 %v357_v48, %s801_s22  ;;  %v689_v57 = vmul.f32 -1.442695, %v357_v48  ;;  %776 = vpow2.f32 %v687_v56 }
 0x196   : > { %778 = vpow2.f32 %v689_v57 }
 0x197   : > { %780 = vpow2.f32 %v688_v58 }
 0x19d   : > { %v775_v59 = vpop.eup %774 }
 0x19e   : > { %v777_v60 = vpop.eup %776  ;;  %v413_v63 = vadd.f32 1.0, %v775_v59 }
 0x19f   : > { %v414_v0 = vadd.f32 1.0, %v777_v60 }
 0x1a0   : > { %v394_v51 = vpop.f32.mrb[4].mxu1  ;;  %v779_v61 = vpop.eup %778  ;;  %782 = vrcp.f32 %v413_v63 }
 0x1a1   : > { %435 = vrot.lane.b32.xlu1 %v394_v51, %s801_s22  ;;  %v728_v52 = vpop.f32.mrb[5].mxu1  ;;  %v781_v62 = vpop.eup %780  ;;  %v416_v3 = vadd.f32 1.0, %v779_v61  ;;  %784 = vrcp.f32 %v414_v0 }
 0x1a2   : > { %v397_v53 = vpop.f32.mrb[6].mxu1  ;;  %v415_v4 = vadd.f32 1.0, %v781_v62 }
 0x1a3   : > { %v729_v54 = vpop.f32.mrb[7].mxu1  ;;  %786 = vrcp.f32 %v416_v3 }
 0x1a4   : > { %788 = vrcp.f32 %v415_v4 }
 0x1a5   : > { %439 = vrot.lane.b32.xlu1 %v397_v53, %s801_s22 }
 0x1aa   : > { %v783_v6 = vpop.eup %782 }
 0x1ab   : > { %v785_v7 = vpop.eup %784  ;;  %v425_v14 = vmul.f32 %v783_v6, %v351_v45 }
 0x1ac   : > { %v426_v11 = vmul.f32 %v785_v7, %v353_v46 }
 0x1ad   : > { %v787_v8 = vpop.eup %786 }
 0x1ae   : > { %v789_v10 = vpop.eup %788  ;;  %v428_v13 = vmul.f32 %v787_v8, %v357_v48 }
 0x1af   : > { %v427_v15 = vmul.f32 %v789_v10, %v355_v47 }
 0x204   : > { %v434_v5 = vpop.permute.xlu1 %433 }
 0x206   : > { %v438_v16 = vpop.permute.xlu0 %437 }
 0x213   : > { %v436_v9 = vpop.permute.xlu1 %435 }
 0x214   : > { %v441_v12 = vsel %vm209_vm0, %v434_v5, %v436_v9  ;;  %v448_v18 = vmul.f32 %v436_v9, %v426_v11 }
 0x215   : > { %v447_v21 = vmul.f32 %v441_v12, %v425_v14 }
 0x217   : > { %v440_v17 = vpop.permute.xlu1 %439 }
 0x218   : > { %v442_v19 = vsel %vm209_vm0, %v438_v16, %v440_v17  ;;  %v450_v20 = vmul.f32 %v440_v17, %v428_v13 }
 0x219   : > { %v449_v22 = vmul.f32 %v442_v19, %v427_v15 }
 0x21a   : > { %v452_v23 = vpack.c.bf16 %v450_v20, %v448_v18 }
 0x21b   : > { %v451_v24 = vpack.c.bf16 %v449_v22, %v447_v21 }
 0x21c   : > { %702 = vmatprep.mubr.msk.bf16.mxu0 %vm209_vm0, %v452_v23 }
 0x21d   : > { %585 = vmatmul.mubr.bf16.vlgmr.msra.gmra.mrb[0].mxu0 %v451_v24 }
 0x2f0   : > { %v586_v25 = vpop.f32.mrb[0].mxu0 }
 0x2f1   : > { %v593_v26 = vadd.f32 %v843_v1, %v586_v25  ;;  %v588_v27 = vpop.f32.mrb[1].mxu0 }
 0x2f2   : > { %v589_v28 = vpop.f32.mrb[2].mxu0 }
 0x2f3   : > { %v707_v29 = vpack.c.bf16 %v593_v26, %v593_v26  ;;  %v594_v30 = vadd.f32 %v845_v2, %v589_v28  ;;  %v591_v31 = vpop.f32.mrb[3].mxu0 }
 0x2f5   : > { %604 = vst.msk [vmem:[%s199_s29] sm:$0xf] %vm603_vm2, %v707_v29  ;;  %v708_v32 = vpack.c.bf16 %v594_v30, %v594_v30 }
 0x2f7   : > { %605 = vst.msk [vmem:[%s199_s29 + $0x4] sm:$0xf] %vm603_vm2, %v708_v32 }
 0x2f8 PF: > { %s14_s15 = sadd.s32 1, %s796_s15  }
 0x2f9   : > { %p11_p4 = scmp.ge.s32.totalorder %s14_s15, 4  }
 0x2fb   :  { %13 = sbr.rel (!%p11_p4) target bundleno = 1 (0x1), region = 66 }

// kernel: myllama_forward.9
= control target key start
LH: loop header
LB: loop body
LE: loop exit
PB: predicated region body
PF: predicated region fallthrough
CT: control target
= control target key end

     0   :  { %12 = vsyncpa [#allocation3], 0  ;;  %s1692_s0 = inlined_call_operand.vmem [shape: bf16[32,64], index: 0, kind: input, shape index: {}]   ;;  %s1693_s1 = inlined_call_operand.vmem [shape: f32[1,64], index: 1, kind: input, shape index: {}]   ;;  %s1694_s2 = inlined_call_operand.vmem [shape: bf16[512,64], index: 2, kind: input, shape index: {}]   ;;  %s1695_s3 = inlined_call_operand.vmem [shape: s32[32,1], index: 3, kind: input, shape index: {}]   ;;  %s1696_s4 = inlined_call_operand.hbm [shape: f32[32,512], index: 4, kind: output, shape index: {0}]   ;;  %s1697_s5 = inlined_call_operand.vmem [shape: f32[2,1,128], index: 5, kind: output, shape index: {1}]   ;;  %s1698_s6 = inlined_call_operand.vmem [shape: f32[2,1,128], index: 6, kind: output, shape index: {2}]  }
   0x1   :  { %14 = vsyncpa [#allocation3 + $0x1], 0  ;;  %s1355_s21 = smov 0   ;;  %s1357_s22 = smov 0  }
   0x2   :  { %s1359_s23 = smov 0   ;;  %s1361_s24 = smov 0  }
   0x3 LB: > { %s1376_s25 = sadd.s32 4294967295, %s1313_s24   ;;  %s1028_s26 = sadd.s32 4294967294, %s1313_s24   ;;  %s1313_s24 = sphi %s1361_s24, %s1704_s24   ;;  %s1309_s23 = sphi %s1359_s23, %s1703_s23   ;;  %s1305_s22 = sphi %s1357_s22, %s1702_s22   ;;  %s1301_s21 = sphi %s1355_s21, %s1701_s21  }
   0x4   : > { %s1380_s27 = sadd.s32 1, %s1313_s24   ;;  %s121_s28 = sadd.s32 1, %s1309_s23 }
   0x5   : > { %s118_s29 = ssub.s32 %s1313_s24, %s1380_s27  ;;  %p131_p0 = scmp.ne.s32.totalorder %s1309_s23, %s1305_s22 }
   0x6   : > { %p119_p1 = scmp.eq.s32.totalorder %s118_s29, 0  ;;  %p132_p2 = scmp.eq.s32.totalorder %s1376_s25, 1 }
   0x7   : > { %p137_p3 = scmp.ne.s32.totalorder %s1305_s22, %s1301_s21  ;;  %p138_p4 = scmp.eq.s32.totalorder %s1028_s26, 1 }
   0x8   : > { %s1391_s30 = scalar_select %p119_p1, %s1309_s23, %s121_s28  }
   0x9   : > { %p1393_p5 = por %p132_p2, %p131_p0  ;;  %p1397_p6 = por %p138_p4, %p137_p3 }
   0xa   : > { %p1031_p7 = scmp.ge.s32.totalorder %s1313_s24, 1  ;;  %p232_p8 = scmp.lt.s32.totalorder %s1313_s24, 3 }
   0xc   : > { %p233_p9 = pnand %p1031_p7, %p232_p8 }
   0xd   : > { %s1033_s9 = sshll.u32 (!%p233_p9), %s1376_s25, 1  ;;  %v1195_v0 = vld [vmem:[%s1694_s2 + $0x40] sm:$0xff] (!%p233_p9)   ;;  %vm300_vm0 = vcmask (!%p233_p9), 523264   ;;  %v1199_v5 = vld [vmem:[%s1694_s2 + $0x48] sm:$0xff] (!%p233_p9)   ;;  %v1203_v16 = vld [vmem:[%s1694_s2 + $0x50] sm:$0xff] (!%p233_p9)   ;;  %v1315_v51 = vmov (!%p233_p9), 0  }
   0xe   : > { %236 = sbr.rel (%p233_p9) target bundleno = 958 (0x3be), region = 36  ;;  %p274_p10 = scmp.lt.s32.totalorder (!%p233_p9), %s1033_s9, 3  ;;  %v1196_v1 = vld [vmem:[%s1694_s2 + $0xc0] sm:$0xff] (!%p233_p9)   ;;  %1130 = vmatprep.subr.msk.bf16.mxu0 (!%p233_p9), %vm300_vm0, %v1195_v0  ;;  %v1200_v6 = vld [vmem:[%s1694_s2 + $0xc8] sm:$0xff] (!%p233_p9)   ;;  %v1204_v19 = vld [vmem:[%s1694_s2 + $0xd0] sm:$0xff] (!%p233_p9)   ;;  %1193 = vset.pattern.permute.xlu0 (!%p233_p9), %v1315_v51  ;;  %vm858_vm11 = vcmask (!%p233_p9), 7168  }
   0xf   : > { %v1197_v2 = vld [vmem:[%s1694_s2] sm:$0xff] (!%p233_p9)   ;;  %1138 = vmatprep.subr.msk.bf16.mxu1 (!%p233_p9), %vm300_vm0, %v1196_v1  ;;  %v1201_v8 = vld [vmem:[%s1694_s2 + $0x8] sm:$0xff] (!%p233_p9)   ;;  %v1205_v21 = vld [vmem:[%s1694_s2 + $0x10] sm:$0xff] (!%p233_p9)   ;;  %1194 = vset.pattern.permute.xlu1 (!%p233_p9), %v1315_v51  ;;  %s260_s13 = sand.u32 (!%p233_p9), 1, %s1305_s22   ;;  %s1089_s16 = sshll.u32 (!%p233_p9), %s1376_s25, 10 }
  0x10   : > { %v1198_v3 = vld [vmem:[%s1694_s2 + $0x80] sm:$0xff] (!%p233_p9)   ;;  %v553_v4 = vsel (!%p233_p9), %vm300_vm0, %v1197_v2, 0  ;;  %v1202_v12 = vld [vmem:[%s1694_s2 + $0x88] sm:$0xff] (!%p233_p9)   ;;  %v556_v15 = vsel (!%p233_p9), %vm300_vm0, %v1201_v8, 0  ;;  %v1206_v22 = vld [vmem:[%s1694_s2 + $0x90] sm:$0xff] (!%p233_p9)   ;;  %v559_v23 = vsel (!%p233_p9), %vm300_vm0, %v1205_v21, 0  ;;  %s1636_s20 = scalar_lea.hbm (!%p233_p9), %s1696_s4, %s1089_s16 }
  0x11   : > { %1095 = vmatpush3.bf16.xpose.msra.mxu0 (!%p233_p9), %v553_v4  ;;  %v601_v7 = vsel (!%p233_p9), %vm300_vm0, %v1198_v3, 0  ;;  %v604_v18 = vsel (!%p233_p9), %vm300_vm0, %v1202_v12, 0  ;;  %v1207_v24 = vld [vmem:[%s1694_s2 + $0x58] sm:$0xff] (!%p233_p9)   ;;  %v607_v25 = vsel (!%p233_p9), %vm300_vm0, %v1206_v22, 0  ;;  %v1211_v30 = vld [vmem:[%s1694_s2 + $0x60] sm:$0xff] (!%p233_p9)   ;;  %v1215_v36 = vld [vmem:[%s1694_s2 + $0x68] sm:$0xff] (!%p233_p9)  }
  0x12   : > { %1113 = vmatpush3.bf16.xpose.msra.mxu1 (!%p233_p9), %v601_v7  ;;  %1131 = vmatprep.subr.msk.bf16.mxu0 (!%p233_p9), %vm300_vm0, %v1199_v5  ;;  %v1208_v26 = vld [vmem:[%s1694_s2 + $0xd8] sm:$0xff] (!%p233_p9)   ;;  %v1212_v32 = vld [vmem:[%s1694_s2 + $0xe0] sm:$0xff] (!%p233_p9)   ;;  %v1216_v38 = vld [vmem:[%s1694_s2 + $0xe8] sm:$0xff] (!%p233_p9)   ;;  %v794_v7 = vlaneseq (!%p233_p9)  ;;  %s1032_s14 = sshll.u32 (!%p233_p9), %s260_s13, 6  ;;  %s1317_s29 = smov (!%p233_p9), [#allocation2]  }
  0x13   : > { %1139 = vmatprep.subr.msk.bf16.mxu1 (!%p233_p9), %vm300_vm0, %v1200_v6  ;;  %v1209_v27 = vld [vmem:[%s1694_s2 + $0x18] sm:$0xff] (!%p233_p9)   ;;  %v1213_v33 = vld [vmem:[%s1694_s2 + $0x20] sm:$0xff] (!%p233_p9)   ;;  %v1217_v39 = vld [vmem:[%s1694_s2 + $0x28] sm:$0xff] (!%p233_p9)   ;;  %s1587_s15 = scalar_lea.vmem (!%p233_p9), [#allocation2], %s1032_s14 }
  0x14   : > { %v1210_v28 = vld [vmem:[%s1694_s2 + $0x98] sm:$0xff] (!%p233_p9)   ;;  %v562_v29 = vsel (!%p233_p9), %vm300_vm0, %v1209_v27, 0  ;;  %v1214_v34 = vld [vmem:[%s1694_s2 + $0xa0] sm:$0xff] (!%p233_p9)   ;;  %v565_v35 = vsel (!%p233_p9), %vm300_vm0, %v1213_v33, 0  ;;  %v1218_v40 = vld [vmem:[%s1694_s2 + $0xa8] sm:$0xff] (!%p233_p9)   ;;  %v568_v41 = vsel (!%p233_p9), %vm300_vm0, %v1217_v39, 0 }
  0x15   : > { %s1706_s9 = smov (!%p274_p10, %s1033_s9), 3  ;;  %v610_v31 = vsel %vm300_vm0, %v1210_v28, 0  ;;  %v613_v37 = vsel %vm300_vm0, %v1214_v34, 0  ;;  %v1219_v42 = vld [vmem:[%s1694_s2 + $0x70] sm:$0xff]   ;;  %v616_v43 = vsel %vm300_vm0, %v1218_v40, 0  ;;  %v1223_v48 = vld [vmem:[%s1694_s2 + $0x78] sm:$0xff]  }
  0x16   : > { %s1034_s18 = sshll.u32 %s1706_s9, 2  ;;  %v1220_v44 = vld [vmem:[%s1694_s2 + $0xf0] sm:$0xff]   ;;  %v1224_v50 = vld [vmem:[%s1694_s2 + $0xf8] sm:$0xff]   ;;  %v1037_v2 = vld [vmem:[%s1693_s1] ss:$0 sm:$0xff]  ;;  %v1567_v8 = vand.u32 127, %v794_v7 }
  0x17   : > { %s277_s11 = scalar_lea.vmem %s1692_s0, %s1034_s18  ;;  %v1221_v45 = vld [vmem:[%s1694_s2 + $0x30] sm:$0xff]   ;;  %s1036_s18 = sshll.u32 %s1706_s9, 3  ;;  %v1225_v52 = vld [vmem:[%s1694_s2 + $0x38] sm:$0xff]  }
  0x18   : > { %v1091_v9 = vld [vmem:[%s277_s11] sm:$0xff]   ;;  %v1222_v46 = vld [vmem:[%s1694_s2 + $0xb0] sm:$0xff]   ;;  %v571_v47 = vsel %vm300_vm0, %v1221_v45, 0  ;;  %s1542_s26 = scalar_lea.vmem %s1695_s3, %s1036_s18  ;;  %v1226_v54 = vld [vmem:[%s1694_s2 + $0xb8] sm:$0xff]   ;;  %v574_v55 = vsel %vm300_vm0, %v1225_v52, 0  ;;  %v1581_v12 = vadd.s32 384, %v1567_v8 }
  0x19   : > { %v1436_v10 = vunpack.c.l.bf16 %v1091_v9  ;;  %v1438_v11 = vunpack.c.h.bf16 %v1091_v9  ;;  %1097 = vmatpush3.bf16.xpose.msra.mxu0 %v556_v15  ;;  %v619_v49 = vsel %vm300_vm0, %v1222_v46, 0  ;;  %v1549_v53 = vld [vmem:[%s1542_s26] sm:$0xff]  ;;  %v622_v56 = vsel %vm300_vm0, %v1226_v54, 0  ;;  %v1602_v39 = vld [vmem:[%s1542_s26 + $0x8] sm:$0xff]  ;;  %s910_s17 = sshll.u32 %s1587_s15, 4  ;;  %s1642_s26 = scalar_lea.sflag [#allocation3], %s260_s13  ;;  %s1638_s17 = int_to_ptr.vmem [resolvable:$true] %s910_s17 }
  0x1a   : > { %1115 = vmatpush3.bf16.xpose.msra.mxu1 %v604_v18  ;;  %1132 = vmatprep.subr.msk.bf16.mxu0 %vm300_vm0, %v1203_v16  ;;  %v1570_v9 = vadd.s32 128, %v1567_v8  ;;  %vm847_vm9 = vcmp.ne.s32.totalorder %v1549_v53, 4294967295  ;;  %vm848_vm10 = vcmp.ne.s32.totalorder %v1602_v39, 4294967295  ;;  %s1251_s28 = scalar_lea.vmem %s1638_s17, 1024  ;;  %s1255_s9 = sshll.u32 %s1317_s29, 4  ;;  %s1256_s9 = int_to_ptr.vmem [resolvable:$false] %s1255_s9 }
  0x1b   : > { %v298_v13 = vmul.f32 %v1436_v10, %v1436_v10  ;;  %v299_v14 = vmul.f32 %v1438_v11, %v1438_v11  ;;  %1140 = vmatprep.subr.msk.bf16.mxu1 %vm300_vm0, %v1204_v19  ;;  %p1252_p11 = scmp.ne.s32.totalorder %s1638_s17, %s1251_s28  ;;  %s1257_s10 = scalar_lea.vmem %s1256_s9, 2048 }
  0x1c   : > { %p1258_p0 = scmp.lt.s32.totalorder %s1638_s17, %s1256_s9  ;;  %p1259_p1 = scmp.lt.s32.totalorder %s1257_s10, %s1251_s28 }
  0x1d   : > { %v301_v17 = vsel %vm300_vm0, %v298_v13, 0.0  ;;  %v304_v20 = vsel %vm300_vm0, %v299_v14, 0.0  ;;  %v1316_v13 = vmov 0.0   ;;  %p1253_p12 = pnand %p1252_p11, %p1393_p5 }
  0x1e   : > { %302 = vadd.xlane.f32.xlu0 %v301_v17  ;;  %p1260_p2 = por %p1259_p1, %p1258_p0 }
  0x1f   : > { %p1254_p13 = pneg %p1253_p12 }
  0x21   : > { %1099 = vmatpush3.bf16.xpose.msra.mxu0 %v559_v23  ;;  %p1261_p3 = pnand %p1260_p2, %p1254_p13 }
  0x22   : > { %305 = vadd.xlane.f32.xlu0 %v304_v20  ;;  %1117 = vmatpush3.bf16.xpose.msra.mxu1 %v607_v25 }
  0x23   : > { %1133 = vmatprep.subr.msk.bf16.mxu0 %vm300_vm0, %v1207_v24  ;;  %1141 = vmatprep.subr.msk.bf16.mxu1 %vm300_vm0, %v1208_v26 }
  0x29   : > { %1101 = vmatpush3.bf16.xpose.msra.mxu0 %v562_v29 }
  0x2a   : > { %1119 = vmatpush3.bf16.xpose.msra.mxu1 %v610_v31  ;;  %1134 = vmatprep.subr.msk.bf16.mxu0 %vm300_vm0, %v1211_v30 }
  0x2b   : > { %1142 = vmatprep.subr.msk.bf16.mxu1 %vm300_vm0, %v1212_v32 }
  0x31   : > { %1103 = vmatpush3.bf16.xpose.msra.mxu0 %v565_v35 }
  0x32   : > { %1121 = vmatpush3.bf16.xpose.msra.mxu1 %v613_v37  ;;  %1135 = vmatprep.subr.msk.bf16.mxu0 %vm300_vm0, %v1215_v36 }
  0x33   : > { %1143 = vmatprep.subr.msk.bf16.mxu1 %vm300_vm0, %v1216_v38 }
  0x38   : > { %800 = vperm.xlu0 %1193, %v1549_v53  }
  0x39   : > { %1105 = vmatpush3.bf16.xpose.msra.mxu0 %v568_v41 }
  0x3a   : > { %1123 = vmatpush3.bf16.xpose.msra.mxu1 %v616_v43  ;;  %1136 = vmatprep.subr.msk.bf16.mxu0 %vm300_vm0, %v1219_v42 }
  0x3b   : > { %1144 = vmatprep.subr.msk.bf16.mxu1 %vm300_vm0, %v1220_v44 }
  0x41   : > { %1107 = vmatpush3.bf16.xpose.msra.mxu0 %v571_v47 }
  0x42   : > { %1125 = vmatpush3.bf16.xpose.msra.mxu1 %v619_v49  ;;  %1137 = vmatprep.subr.msk.bf16.mxu0 %vm300_vm0, %v1223_v48 }
  0x43   : > { %1145 = vmatprep.subr.msk.bf16.mxu1 %vm300_vm0, %v1224_v50 }
  0x49   : > { %1109 = vmatpush3.bf16.xpose.msra.mxu0 %v574_v55 }
  0x4a   : > { %1127 = vmatpush3.bf16.xpose.msra.mxu1 %v622_v56 }
  0xab   : > { %v303_v57 = vpop.xlane.xlu0 %302 }
  0xac   : > { %v308_v58 = vmul.f32 0.015625, %v303_v57 }
  0xae   : > { %v310_v59 = vadd.f32 1e-06, %v308_v58 }
  0xaf   : > { %v306_v60 = vpop.xlane.xlu0 %305 }
  0xb0   : > { %1227 = vrsqrt.f32 %v310_v59  ;;  %v309_v61 = vmul.f32 0.015625, %v306_v60 }
  0xb2   : > { %v311_v62 = vadd.f32 1e-06, %v309_v61 }
  0xb4   : > { %1229 = vrsqrt.f32 %v311_v62 }
  0xba   : > { %v1228_v63 = vpop.eup %1227 }
  0xbb   : > { %v314_v0 = vmul.f32 %v1228_v63, %v1436_v10  ;;  %v801_v10 = vpop.permute.xlu0 %800 }
  0xbc   : > { %vm805_vm1 = vcmp.eq.s32.totalorder %v1567_v8, %v801_v10  ;;  %vm806_vm2 = vcmp.eq.s32.totalorder %v1570_v9, %v801_v10  ;;  %vm808_vm4 = vcmp.eq.s32.totalorder %v1581_v12, %v801_v10 }
  0xbd   : > { %v322_v4 = vmul.f32 %v1037_v2, %v314_v0  ;;  %v1072_v14 = vsel %vm805_vm1, 1.0, %v1316_v13  ;;  %v1073_v15 = vsel %vm806_vm2, 1.0, %v1316_v13  ;;  %v1075_v30 = vsel %vm808_vm4, 1.0, %v1316_v13 }
  0xbe   : > { %v1230_v1 = vpop.eup %1229 }
  0xbf   : > { %v315_v3 = vmul.f32 %v1230_v1, %v1438_v11  ;;  %v1574_v11 = vadd.s32 256, %v1567_v8 }
  0xc1   : > { %v323_v5 = vmul.f32 %v1037_v2, %v315_v3  ;;  %vm807_vm3 = vcmp.eq.s32.totalorder %v1574_v11, %v801_v10 }
  0xc2   : > { %v1074_v22 = vsel %vm807_vm3, 1.0, %v1316_v13 }
  0xc3   : > { %v324_v6 = vpack.c.bf16 %v323_v5, %v322_v4 }
  0xc5   : > { %1110 = vmatprep.mubr.msk.bf16.mxu0 %vm300_vm0, %v324_v6  ;;  %1128 = vmatprep.mubr.msk.bf16.mxu1 %vm300_vm0, %v324_v6 }
  0xc6   : > { %1111 = vmatmul.mubr.msk.bf16.vlgmr.msra.gmra.mrb[0].mxu0 %vm300_vm0, %v324_v6  ;;  %1129 = vmatmul.mubr.msk.bf16.vlgmr.msra.gmra.mrb[0].mxu1 %vm300_vm0, %v324_v6 }
 0x199   : > { %v682_v16 = vpop.f32.mrb[0].mxu0  ;;  %v725_v17 = vpop.f32.mrb[0].mxu1 }
 0x19a   : > { %734 = vst [vmem:[%s1587_s15] sm:$0xff] %v682_v16  ;;  %v829_v18 = vmul.f32 %v1072_v14, %v682_v16  ;;  %736 = vst [vmem:[%s1587_s15 + $0x10] sm:$0xff] %v725_v17  ;;  %v684_v19 = vpop.f32.mrb[1].mxu0  ;;  %v727_v20 = vpop.f32.mrb[1].mxu1  ;;  %v744_v21 = vmax.f32 %v682_v16, %v725_v17  ;;  %v831_v33 = vmul.f32 %v1074_v22, %v725_v17 }
 0x19b   : > { %735 = vst [vmem:[%s1587_s15 + $0x8] sm:$0xff] %v684_v19  ;;  %v830_v23 = vmul.f32 %v1073_v15, %v684_v19  ;;  %737 = vst [vmem:[%s1587_s15 + $0x18] sm:$0xff] %v727_v20  ;;  %v686_v24 = vpop.f32.mrb[2].mxu0  ;;  %v729_v25 = vpop.f32.mrb[2].mxu1  ;;  %v745_v26 = vmax.f32 %v684_v19, %v727_v20  ;;  %v832_v36 = vmul.f32 %v1075_v30, %v727_v20 }
 0x19c   : > { %738 = vst [vmem:[%s1587_s15 + $0x20] sm:$0xff] %v686_v24  ;;  %740 = vst [vmem:[%s1587_s15 + $0x30] sm:$0xff] %v729_v25  ;;  %v688_v27 = vpop.f32.mrb[3].mxu0  ;;  %v731_v28 = vpop.f32.mrb[3].mxu1  ;;  %v749_v29 = vmax.f32 %v686_v24, %v729_v25 }
 0x19d   : > { %739 = vst [vmem:[%s1587_s15 + $0x28] sm:$0xff] %v688_v27  ;;  %741 = vst [vmem:[%s1587_s15 + $0x38] sm:$0xff] %v731_v28  ;;  %v746_v31 = vmax.f32 %v744_v21, %v745_v26  ;;  %v750_v32 = vmax.f32 %v688_v27, %v731_v28  ;;  %v837_v34 = vadd.f32 %v830_v23, %v829_v18 }
 0x19f   : > { %747 = vmax.xlane.f32.xlu1 %v746_v31  ;;  %v751_v35 = vmax.f32 %v749_v29, %v750_v32  ;;  %v838_v37 = vadd.f32 %v837_v34, %v831_v33  ;;  %v1080_v32 = vsel %vm847_vm9, 1.0, %v1316_v13  ;;  %v1081_v34 = vsel %vm848_vm10, 1.0, %v1316_v13 }
 0x1a1   : > { %v839_v38 = vadd.f32 %v838_v37, %v832_v36 }
 0x1a3   : > { %752 = vmax.xlane.f32.xlu1 %v751_v35 }
 0x1b4   : > { %803 = vperm.xlu1 %1194, %v1602_v39   ;;  %v874_v39 = vsel %vm858_vm11, %v1080_v32, 0.0 }
 0x22c   : > { %v1605_v40 = vpop.xlane.xlu1 %747 }
 0x22d   : > { %v754_v41 = vsub.f32 %v682_v16, %v1605_v40  ;;  %v755_v42 = vsub.f32 %v684_v19, %v1605_v40  ;;  %v756_v43 = vsub.f32 %v725_v17, %v1605_v40  ;;  %v757_v44 = vsub.f32 %v727_v20, %v1605_v40 }
 0x22f   : > { %v762_v45 = vmul.f32 1.442695, %v754_v41  ;;  %v764_v46 = vmul.f32 1.442695, %v755_v42  ;;  %v766_v47 = vmul.f32 1.442695, %v756_v43 }
 0x230   : > { %v768_v48 = vmul.f32 1.442695, %v757_v44  ;;  %v1611_v49 = vpop.xlane.xlu1 %752  ;;  %v875_v41 = vsel %vm858_vm11, %v1081_v34, 0.0 }
 0x231   : > { %1231 = vpow2.f32 %v762_v45  ;;  %v758_v50 = vsub.f32 %v686_v24, %v1611_v49  ;;  %v759_v51 = vsub.f32 %v688_v27, %v1611_v49  ;;  %v760_v52 = vsub.f32 %v729_v25, %v1611_v49 }
 0x232   : > { %1233 = vpow2.f32 %v764_v46  ;;  %v761_v54 = vsub.f32 %v731_v28, %v1611_v49  ;;  %v876_v43 = vadd.f32 %v875_v41, %v874_v39 }
 0x233   : > { %1235 = vpow2.f32 %v766_v47  ;;  %v770_v55 = vmul.f32 1.442695, %v758_v50  ;;  %v772_v56 = vmul.f32 1.442695, %v759_v51  ;;  %v774_v57 = vmul.f32 1.442695, %v760_v52 }
 0x234   : > { %1237 = vpow2.f32 %v768_v48  ;;  %v776_v58 = vmul.f32 1.442695, %v761_v54  ;;  %v804_v59 = vpop.permute.xlu1 %803 }
 0x235   : > { %1239 = vpow2.f32 %v770_v55  ;;  %vm809_vm5 = vcmp.eq.s32.totalorder %v1567_v8, %v804_v59  ;;  %vm810_vm6 = vcmp.eq.s32.totalorder %v1570_v9, %v804_v59  ;;  %vm811_vm7 = vcmp.eq.s32.totalorder %v1574_v11, %v804_v59 }
 0x236   : > { %1241 = vpow2.f32 %v772_v56  ;;  %v1076_v60 = vsel %vm809_vm5, 1.0, %v1316_v13  ;;  %v1077_v61 = vsel %vm810_vm6, 1.0, %v1316_v13  ;;  %vm812_vm8 = vcmp.eq.s32.totalorder %v1581_v12, %v804_v59 }
 0x237   : > { %v1078_v62 = vsel %vm811_vm7, 1.0, %v1316_v13  ;;  %v833_v63 = vmul.f32 %v1076_v60, %v686_v24  ;;  %1243 = vpow2.f32 %v774_v57  ;;  %v834_v0 = vmul.f32 %v1077_v61, %v688_v27 }
 0x238   : > { %v1079_v1 = vsel %vm812_vm8, 1.0, %v1316_v13  ;;  %1245 = vpow2.f32 %v776_v58  ;;  %v835_v2 = vmul.f32 %v1078_v62, %v729_v25 }
 0x239   : > { %v842_v3 = vadd.f32 %v834_v0, %v833_v63  ;;  %v836_v6 = vmul.f32 %v1079_v1, %v731_v28 }
 0x23b   : > { %v1232_v4 = vpop.eup %1231  ;;  %v843_v7 = vadd.f32 %v842_v3, %v835_v2 }
 0x23c   : > { %v1234_v5 = vpop.eup %1233 }
 0x23d   : > { %v1236_v9 = vpop.eup %1235  ;;  %v778_v10 = vadd.f32 %v1234_v5, %v1232_v4  ;;  %v844_v14 = vadd.f32 %v843_v7, %v836_v6 }
 0x23e   : > { %v1238_v11 = vpop.eup %1237 }
 0x23f   : > { %v1240_v15 = vpop.eup %1239  ;;  %v779_v12 = vadd.f32 %v1236_v9, %v778_v10 }
 0x240   : > { %v1242_v16 = vpop.eup %1241 }
 0x241   : > { %v780_v17 = vadd.f32 %v1238_v11, %v779_v12  ;;  %v783_v18 = vadd.f32 %v1242_v16, %v1240_v15  ;;  %v1244_v19 = vpop.eup %1243 }
 0x242   : > { %v1246_v21 = vpop.eup %1245 }
 0x243   : > { %781 = vadd.xlane.f32.xlu1 %v780_v17  ;;  %v784_v20 = vadd.f32 %v1244_v19, %v783_v18 }
 0x245   : > { %v785_v22 = vadd.f32 %v1246_v21, %v784_v20 }
 0x247   : > { %786 = vadd.xlane.f32.xlu0 %v785_v22  ;;  %840 = vadd.xlane.f32.xlu1 %v839_v38 }
 0x24b   : > { %845 = vadd.xlane.f32.xlu1 %v844_v14 }
 0x2d0   : > { %v782_v23 = vpop.xlane.xlu1 %781 }
 0x2d1   : > { %1247 = vlog2.f32 %v782_v23 }
 0x2d4   : > { %v787_v24 = vpop.xlane.xlu0 %786  ;;  %v841_v27 = vpop.xlane.xlu1 %840 }
 0x2d5   : > { %1249 = vlog2.f32 %v787_v24 }
 0x2d8   : > { %v846_v35 = vpop.xlane.xlu1 %845 }
 0x2db   : > { %v1248_v25 = vpop.eup %1247 }
 0x2dc   : > { %v789_v26 = vmul.f32 0.6931472, %v1248_v25 }
 0x2de   : > { %v792_v28 = vadd.f32 %v789_v26, %v1605_v40 }
 0x2df   : > { %v1250_v29 = vpop.eup %1249 }
 0x2e0   : > { %v853_v30 = vsub.f32 %v792_v28, %v841_v27  ;;  %v791_v31 = vmul.f32 0.6931472, %v1250_v29 }
 0x2e2   : > { %v793_v33 = vadd.f32 %v791_v31, %v1611_v49  ;;  %v855_v36 = vmul.f32 %v1080_v32, %v853_v30 }
 0x2e4   : > { %v854_v37 = vsub.f32 %v793_v33, %v846_v35  ;;  %v859_v38 = vsel %vm858_vm11, %v855_v36, 0.0 }
 0x2e6   : > { %v856_v53 = vmul.f32 %v1081_v34, %v854_v37 }
 0x2e8   : > { %v860_v40 = vsel %vm858_vm11, %v856_v53, 0.0 }
 0x2e9   : > { %v861_v42 = vadd.f32 %v860_v40, %v859_v38 }
 0x2eb   : > { %862 = vadd.xlane.f32.xlu1 %v861_v42 }
 0x2ef   : > { %877 = vadd.xlane.f32.xlu1 %v876_v43 }
 0x2f0   : > { %1264 = shalt.err (!%p1261_p3)
}
 0x2f1   : > { %s1265_s11 = scalar_lea.hbm %s1636_s20, 1024  ;;  %s1269_s14 = scalar_lea.hbm %s1696_s4, 2048 }
 0x2f2   : > { %p1266_p4 = scmp.ne.s32.totalorder %s1636_s20, %s1265_s11  ;;  %p1270_p9 = scmp.lt.u32.totalorder %s1636_s20, %s1696_s4 }
 0x2f3   : > { %p1271_p10 = scmp.lt.u32.totalorder %s1269_s14, %s1265_s11  ;;  %p1273_p12 = scmp.lt.u32.totalorder %s1265_s11, %s1636_s20 }
 0x2f4   : > { %p1267_p7 = pnand %p1266_p4, %p1393_p5 }
 0x2f5   : > { %p1272_p11 = por %p1271_p10, %p1270_p9 }
 0x2f6   : > { %p1268_p8 = pneg %p1267_p7 }
 0x2f7   : > { %p1274_p13 = por %p1273_p12, %p1272_p11 }
 0x2f9   : > { %p1275_p0 = pnand %p1274_p13, %p1268_p8 }
 0x2fb   : > { %1278 = shalt.err (!%p1275_p0)
}
 0x2fc   : > { %s1318_s18 = smov 512   ;;  %s1319_s19 = smov 32   ;;  %vm857_vm12 = vcmp.eq.s32.totalorder %v1567_v8, 0 }
 0x2fd   : > { %1150 = dma.vmem_to_hbm [thread:$0]  (%p1393_p5), %s1638_s17, 1024, %s1636_s20, %s1642_s26, %s1318_s18, %s1318_s18, %s1319_s19  }
 0x2fe   : > { %p286_p1 = scmp.lt.s32.totalorder %s1376_s25, 1 }
 0x300   : > { %s1708_s25 = smov (!%p286_p1, %s1376_s25), 1 }
 0x301   : > { %s288_s20 = scalar_lea.vmem %s1697_s5, %s1708_s25  ;;  %s291_s9 = scalar_lea.vmem %s1698_s6, %s1708_s25 }
 0x378   : > { %v863_v13 = vpop.xlane.xlu1 %862 }
 0x379   : > { %v864_v44 = vrot.slane %v863_v13, 4 }
 0x37b   : > { %v865_v45 = vadd.f32 %v864_v44, %v863_v13 }
 0x37c   : > { %v878_v46 = vpop.xlane.xlu1 %877 }
 0x37d   : > { %v866_v47 = vrot.slane %v865_v45, 2  ;;  %v879_v48 = vrot.slane %v878_v46, 4 }
 0x37f   : > { %v880_v49 = vadd.f32 %v879_v48, %v878_v46  ;;  %v867_v50 = vadd.f32 %v866_v47, %v865_v45 }
 0x381   : > { %v881_v51 = vrot.slane %v880_v49, 2  ;;  %v868_v52 = vrot.slane %v867_v50, 1 }
 0x383   : > { %v882_v54 = vadd.f32 %v881_v51, %v880_v49  ;;  %v869_v55 = vadd.f32 %v868_v52, %v867_v50 }
 0x385   : > { %1146 = vpush %v869_v55  ;;  %v883_v56 = vrot.slane %v882_v54, 1 }
 0x387   : > { %v884_v57 = vadd.f32 %v883_v56, %v882_v54 }
 0x389   : > { %1148 = vpush %v884_v57 }
 0x3b6   : > { %s1147_s26 = spop %1146 }
 0x3b7   : > { %v871_v58 = vstv %s1147_s26 }
 0x3b8   : > { %v872_v59 = vsel %vm857_vm12, %v871_v58, 0.0 }
 0x3b9   : > { %873 = vst [vmem:[%s288_s20] sm:$0x1] %v872_v59 }
 0x3ba   : > { %s1149_s10 = spop %1148 }
 0x3bb   : > { %v886_v60 = vstv %s1149_s10 }
 0x3bc   : > { %v887_v61 = vsel %vm857_vm12, %v886_v60, 0.0 }
 0x3bd   : > { %888 = vst [vmem:[%s291_s9] sm:$0x1] %v887_v61 }
 0x3be PF: > { %p1156_p5 = scmp.ge.s32.totalorder %s1313_s24, 2  ;;  %s931_s11 = sand.u32 1, %s1301_s21  }
 0x3bf   : > { %s932_s12 = scalar_lea.sflag [#allocation3], %s931_s11 }
 0x3c0   : > { %p1153_p2 = pnand %p1156_p5, %p1397_p6 }
 0x3c2   : > { %1296 = dma.done.wait (!%p1153_p2), %s932_s12, 1024  }
 0x3c3   : > { %1298 = vsyncadd (!%p1153_p2), %s932_s12, 4294966272  ;;  %p17_p3 = scmp.ge.s32.totalorder %s1380_s27, 4   ;;  %s1701_s21 = smov %s1305_s22 }
 0x3c4   : > { %s1702_s22 = smov %s1309_s23  ;;  %s1703_s23 = smov %s1391_s30 }
 0x3c5   : > { %s1704_s24 = smov %s1380_s27  ;;  %19 = sbr.rel (!%p17_p3) target bundleno = 3 (0x3), region = 98 }
 0x3cc   :  { %949 = vsyncpa [#allocation3], 1 }
 0x3cd   :  { %951 = vsyncpa [#allocation3 + $0x1], 1 }

// kernel: myllama_forward.5
= control target key start
LH: loop header
LB: loop body
LE: loop exit
PB: predicated region body
PF: predicated region fallthrough
CT: control target
= control target key end

     0   :  { %s1614_s21 = smov 0   ;;  %s1951_s0 = inlined_call_operand.vmem [shape: bf16[2,16,64], index: 0, kind: input, shape index: {}, may-alias: {0,6}]   ;;  %s1952_s1 = inlined_call_operand.vmem [shape: f32[1,64], index: 1, kind: input, shape index: {}]   ;;  %s1953_s2 = inlined_call_operand.vmem [shape: bf16[64,128], index: 2, kind: input, shape index: {}]   ;;  %s1954_s3 = inlined_call_operand.vmem [shape: bf16[64,64], index: 3, kind: input, shape index: {}]   ;;  %s1955_s4 = inlined_call_operand.vmem [shape: f32[16,16], index: 4, kind: input, shape index: {}]   ;;  %s1956_s5 = inlined_call_operand.vmem [shape: f32[16,16], index: 5, kind: input, shape index: {}]   ;;  %s1957_s6 = inlined_call_operand.vmem [shape: bf16[2,16,64], index: 6, kind: output, shape index: {}, may-alias: {0,6}]  }
   0x1 LB: > { %s1319_s22 = sadd.s32 4294967295, %s1561_s21   ;;  %p1323_p0 = scmp.ge.s32.totalorder %s1561_s21, 1  ;;  %s1561_s21 = sphi %s1614_s21, %s16_s21  }
   0x2   : > { %p212_p1 = scmp.lt.s32.totalorder %s1561_s21, 3 }
   0x4   : > { %p213_p2 = pnand %p1323_p0, %p212_p1 }
   0x5   : > { %p242_p3 = scmp.lt.s32.totalorder (!%p213_p2), %s1319_s22, 1  ;;  %vm264_vm0 = vcmask (!%p213_p2), 523264   ;;  %v1511_v7 = vld [vmem:[%s1953_s2] sm:$0xff] (!%p213_p2)   ;;  %v1563_v8 = vmov (!%p213_p2), 0.0   ;;  %vm1564_vm1 = vmmov (!%p213_p2), 0   ;;  %v1512_v9 = vld [vmem:[%s1953_s2 + $0x8] sm:$0xff] (!%p213_p2)  }
   0x6   : > { %216 = sbr.rel (%p213_p2) target bundleno = 3055 (0xbef), region = 44  ;;  %1391 = vmatprep.subr.bf16.mxu0 (!%p213_p2), %v1563_v8  ;;  %1399 = vmatprep.mubr.msk.bf16.mxu0 (!%p213_p2), %vm1564_vm1, %v1563_v8  ;;  %v1513_v10 = vld [vmem:[%s1953_s2 + $0x10] sm:$0xff] (!%p213_p2)   ;;  %v1514_v11 = vld [vmem:[%s1953_s2 + $0x18] sm:$0xff] (!%p213_p2)   ;;  %v1328_v21 = vld [vmem:[%s1952_s1] ss:$0 sm:$0xff] (!%p213_p2)  ;;  %s1565_s13 = smov (!%p213_p2), 72  }
   0x7   : > { %1392 = vmatpush3.bf16.msra.mxu0 (!%p213_p2), %v1511_v7  ;;  %1403 = vmatprep.subr.bf16.mxu1 (!%p213_p2), %v1563_v8  ;;  %s1566_s14 = smov (!%p213_p2), 56   ;;  %s1567_s15 = smov (!%p213_p2), 120   ;;  %v1688_v31 = vld [vmem:[%s1955_s4] sm:$0xff] (!%p213_p2)  ;;  %v1694_v32 = vld [vmem:[%s1955_s4 + $0x8] sm:$0xff] (!%p213_p2)  ;;  %vm379_vm2 = vcmask (!%p213_p2), 64512   ;;  %vm466_vm3 = vcmask (!%p213_p2), 130048  }
   0x8   : > { %1393 = vmatprep.subr.bf16.mxu0 (!%p213_p2), %v1563_v8  ;;  %1405 = vmatprep.mubr.msk.bf16.mxu1 (!%p213_p2), %vm1564_vm1, %v1563_v8  ;;  %s1568_s16 = smov (!%p213_p2), 8   ;;  %s1569_s19 = smov (!%p213_p2), 64   ;;  %v1700_v33 = vld [vmem:[%s1956_s5] sm:$0xff] (!%p213_p2)  ;;  %v1715_v39 = vld [vmem:[%s1956_s5 + $0x8] sm:$0xff] (!%p213_p2)  ;;  %vm1261_vm6 = vcmask (!%p213_p2), 519168  }
   0x9   : > { %s1570_s29 = smov (!%p213_p2), 32   ;;  %s1571_s30 = smov (!%p213_p2), 40  }
   0xa   : > { %s1572_s7 = smov (!%p213_p2), 104   ;;  %s1573_s8 = smov (!%p213_p2), 88  }
   0xb   : > { %1394 = vmatpush3.bf16.msra.mxu0 (!%p213_p2), %v1512_v9  ;;  %s1574_s9 = smov (!%p213_p2), 80   ;;  %s1575_s10 = smov (!%p213_p2), 16  }
   0xc   : > { %1395 = vmatprep.subr.bf16.mxu0 (!%p213_p2), %v1563_v8 }
   0xd   : > { %s1959_s22 = smov (!%p242_p3, %s1319_s22), 1 }
   0xe   : > { %s1354_s23 = sshll.u32 %s1959_s22, 3 }
   0xf   : > { %s246_s26 = scalar_lea.vmem %s1951_s0, %s1354_s23  ;;  %1396 = vmatpush3.bf16.msra.mxu0 %v1513_v10  ;;  %s251_s27 = scalar_lea.vmem %s1957_s6, %s1354_s23 }
  0x10   : > { %v1359_v0 = vld [vmem:[%s246_s26] sm:$0xff]   ;;  %1397 = vmatprep.subr.bf16.mxu0 %v1563_v8 }
  0x11   : > { %v1630_v1 = vunpack.c.l.bf16 %v1359_v0  ;;  %v1632_v2 = vunpack.c.h.bf16 %v1359_v0 }
  0x13   : > { %v262_v3 = vmul.f32 %v1630_v1, %v1630_v1  ;;  %v263_v4 = vmul.f32 %v1632_v2, %v1632_v2  ;;  %1398 = vmatpush3.bf16.msra.mxu0 %v1514_v11 }
  0x14   : > { %1427 = vmatprep.subr.bf16.mxu0 %v1563_v8 }
  0x15   : > { %v265_v5 = vsel %vm264_vm0, %v262_v3, 0.0  ;;  %v268_v6 = vsel %vm264_vm0, %v263_v4, 0.0 }
  0x16   : > { %266 = vadd.xlane.f32.xlu0 %v265_v5  ;;  %v435_v5 = vlaneseq }
  0x18   : > { %v1752_v7 = vand.u32 127, %v435_v5 }
  0x1a   : > { %269 = vadd.xlane.f32.xlu0 %v268_v6  ;;  %v1750_v6 = vshrl.u32 %v435_v5, 7 }
  0x1c   : > { %v1755_v9 = vadd.s32 8, %v1750_v6  ;;  %vm440_vm4 = vcmp.le.s32.totalorder %v1752_v7, %v1750_v6 }
  0x1e   : > { %vm441_vm5 = vcmp.le.s32.totalorder %v1752_v7, %v1755_v9 }
  0xa3   : > { %v267_v12 = vpop.xlane.xlu0 %266 }
  0xa4   : > { %v272_v13 = vmul.f32 0.015625, %v267_v12 }
  0xa6   : > { %v274_v14 = vadd.f32 1e-06, %v272_v13 }
  0xa7   : > { %v270_v15 = vpop.xlane.xlu0 %269 }
  0xa8   : > { %1519 = vrsqrt.f32 %v274_v14  ;;  %v273_v16 = vmul.f32 0.015625, %v270_v15 }
  0xaa   : > { %v275_v17 = vadd.f32 1e-06, %v273_v16 }
  0xac   : > { %1521 = vrsqrt.f32 %v275_v17 }
  0xb2   : > { %v1520_v18 = vpop.eup %1519 }
  0xb3   : > { %v278_v19 = vmul.f32 %v1520_v18, %v1630_v1 }
  0xb5   : > { %v286_v23 = vmul.f32 %v1328_v21, %v278_v19 }
  0xb6   : > { %v1522_v20 = vpop.eup %1521 }
  0xb7   : > { %v279_v22 = vmul.f32 %v1522_v20, %v1632_v2 }
  0xb9   : > { %v287_v24 = vmul.f32 %v1328_v21, %v279_v22 }
  0xbb   : > { %v288_v25 = vpack.c.bf16 %v287_v24, %v286_v23 }
  0xbd   : > { %1400 = vmatmul.mubr.msk.bf16.vlgmr.msra.gmra.mrb[0].mxu0 %vm264_vm0, %v288_v25 }
  0xbe   : > { %1429 = vmatprep.mubr.msk.bf16.mxu0 %vm1564_vm1, %v1563_v8 }
 0x190   : > { %v1670_v26 = vpop.f32.mrb[0].mxu0 }
 0x191   : > { %373 = vrot.lane.b32.xlu0 %v1670_v26, %s1565_s13  ;;  %367 = vrot.lane.b32.xlu1 %v1670_v26, %s1566_s14  ;;  %v1401_v27 = vpop.f32.mrb[1].mxu0  ;;  %v456_v61 = vmul.f32 %v1670_v26, %v1688_v31 }
 0x192   : > { %v1674_v28 = vpop.f32.mrb[2].mxu0 }
 0x193   : > { %v1402_v29 = vpop.f32.mrb[3].mxu0  ;;  %v1678_v30 = vpack.c.bf16 %v1674_v28, %v1670_v26  ;;  %v457_v62 = vmul.f32 %v1674_v28, %v1694_v32 }
 0x195   : > { %442 = vrot.lane.b32.xlu0 %v1670_v26, %s1567_s15  ;;  %369 = vrot.lane.b32.xlu1 %v1674_v28, %s1566_s14  ;;  %s1577_s14 = smov 112  }
 0x199   : > { %448 = vrot.lane.b32.xlu0 %v1670_v26, %s1568_s16  ;;  %375 = vrot.lane.b32.xlu1 %v1674_v28, %s1565_s13  ;;  %s1576_s13 = smov 48  }
 0x19d   : > { %384 = vrot.lane.b32.xlu1 %v1688_v31, %s1569_s19 }
 0x1a1   : > { %386 = vrot.lane.b32.xlu1 %v1694_v32, %s1569_s19 }
 0x203   : > { %v1702_v34 = vpop.permute.xlu0 %373  ;;  %v1704_v35 = vpop.permute.xlu1 %367 }
 0x204   : > { %v380_v36 = vsel %vm379_vm2, %v1704_v35, %v1702_v34 }
 0x205   : > { %v392_v37 = vmul.f32 %v380_v36, %v1700_v33 }
 0x207   : > { %396 = vrot.lane.b32.xlu1 %v392_v37, %s1569_s19  ;;  %v1710_v38 = vpop.permute.xlu1 %369  ;;  %v1728_v52 = vpop.permute.xlu0 %442 }
 0x20b   : > { %v1717_v40 = vpop.permute.xlu1 %375  ;;  %v449_v54 = vpop.permute.xlu0 %448 }
 0x20c   : > { %v381_v41 = vsel %vm379_vm2, %v1710_v38, %v1717_v40  ;;  %v454_v56 = vsel %vm379_vm2, %v1728_v52, %v449_v54 }
 0x20d   : > { %v393_v42 = vmul.f32 %v381_v41, %v1715_v39  ;;  %v458_v58 = vmul.f32 %v454_v56, %v1700_v33 }
 0x20f   : > { %398 = vrot.lane.b32.xlu1 %v393_v42, %s1569_s19  ;;  %v385_v43 = vpop.permute.xlu1 %384  ;;  %v460_v0 = vadd.f32 %v458_v58, %v456_v61 }
 0x210   : > { %v390_v46 = vmul.f32 %v385_v43, %v1670_v26 }
 0x213   : > { %444 = vrot.lane.b32.xlu1 %v1674_v28, %s1567_s15  ;;  %v387_v44 = vpop.permute.xlu1 %386  ;;  %s1578_s15 = smov 96  }
 0x214   : > { %v391_v47 = vmul.f32 %v387_v44, %v1674_v28 }
 0x279   : > { %v397_v45 = vpop.permute.xlu1 %396 }
 0x27a   : > { %v402_v49 = vadd.f32 %v397_v45, %v390_v46 }
 0x281   : > { %v399_v48 = vpop.permute.xlu1 %398 }
 0x282   : > { %v403_v50 = vadd.f32 %v399_v48, %v391_v47 }
 0x284   : > { %v404_v51 = vpack.c.bf16 %v403_v50, %v402_v49 }
 0x285   : > { %v1730_v53 = vpop.permute.xlu1 %444 }
 0x286   : > { %464 = vrot.lane.b32.xlu1 %v404_v51, %s1569_s19 }
 0x28a   : > { %450 = vrot.lane.b32.xlu1 %v1674_v28, %s1568_s16 }
 0x2f8   : > { %v465_v55 = vpop.permute.xlu1 %464 }
 0x2f9   : > { %v1735_v57 = vsel %vm466_vm3, %v465_v55, 0 }
 0x2fa   : > { %1404 = vmatpush3.bf16.xpose.msra.mxu1 %v1735_v57 }
 0x2fb   : > { %1409 = vmatprep.subr.bf16.mxu1 %v1563_v8 }
 0x2fc   : > { %v451_v59 = vpop.permute.xlu1 %450 }
 0x2fd   : > { %v455_v60 = vsel %vm379_vm2, %v1730_v53, %v451_v59 }
 0x2fe   : > { %v459_v63 = vmul.f32 %v455_v60, %v1715_v39 }
 0x300   : > { %v461_v3 = vadd.f32 %v459_v63, %v457_v62  ;;  %v1515_v62 = vld [vmem:[%s1954_s3] sm:$0xff]  }
 0x302   : > { %v462_v4 = vpack.c.bf16 %v461_v3, %v460_v0 }
 0x304   : > { %1406 = vmatmul.mubr.msk.bf16.vlgmr.msra.gmra.mrb[0].mxu1 %vm466_vm3, %v462_v4 }
 0x305   : > { %1411 = vmatprep.mubr.msk.bf16.mxu1 %vm1564_vm1, %v1563_v8 }
 0x3d7   : > { %v507_v10 = vpop.f32.mrb[0].mxu1 }
 0x3d8   : > { %v514_v11 = vmul.f32 0.25, %v507_v10  ;;  %v1407_v12 = vpop.f32.mrb[1].mxu1 }
 0x3d9   : > { %v510_v13 = vpop.f32.mrb[2].mxu1 }
 0x3da   : > { %v515_v14 = vmul.f32 0.25, %v510_v13  ;;  %v1408_v15 = vpop.f32.mrb[3].mxu1  ;;  %v516_v16 = vsel %vm440_vm4, %v514_v11, -1e+30 }
 0x3db   : > { %v518_v17 = vsel %vm466_vm3, %v516_v16, -inf }
 0x3dc   : > { %519 = vmax.xlane.f32.xlu0 %v518_v17  ;;  %v517_v18 = vsel %vm441_vm5, %v515_v14, -1e+30 }
 0x3dd   : > { %v521_v19 = vsel %vm466_vm3, %v517_v18, -inf }
 0x3de   : > { %522 = vmax.xlane.f32.xlu1 %v521_v19 }
 0x3ef   : > { %542 = vrot.lane.b32.xlu1 %v1678_v30, %s1570_s29 }
 0x3f3   : > { %407 = vrot.lane.b32.xlu1 %v1674_v28, %s1571_s30 }
 0x3f7   : > { %644 = vrot.lane.b32.xlu1 %v1670_v26, %s1572_s7 }
 0x3fb   : > { %846 = vrot.lane.b32.xlu1 %v1670_v26, %s1573_s8 }
 0x3ff   : > { %413 = vrot.lane.b32.xlu1 %v1688_v31, %s1574_s9 }
 0x403   : > { %652 = vrot.lane.b32.xlu1 %v1688_v31, %s1575_s10 }
 0x469   : > { %v520_v20 = vpop.xlane.xlu0 %519 }
 0x46a   : > { %v524_v21 = vsub.f32 %v516_v16, %v520_v20 }
 0x46b   : > { %v523_v22 = vpop.xlane.xlu1 %522 }
 0x46c   : > { %v526_v23 = vmul.f32 1.442695, %v524_v21  ;;  %v525_v24 = vsub.f32 %v517_v18, %v523_v22 }
 0x46e   : > { %1523 = vpow2.f32 %v526_v23  ;;  %v528_v25 = vmul.f32 1.442695, %v525_v24 }
 0x46f   : > { %v543_v27 = vpop.permute.xlu1 %542 }
 0x470   : > { %1525 = vpow2.f32 %v528_v25  ;;  %1410 = vmatpush3.bf16.msra.mxu1 %v543_v27  ;;  %1428 = vmatpush3.bf16.msra.mxu0 %v543_v27 }
 0x471   : > { %1415 = vmatprep.subr.bf16.mxu1 %v1563_v8  ;;  %1433 = vmatprep.subr.bf16.mxu0 %v1563_v8 }
 0x473   : > { %v408_v42 = vpop.permute.xlu1 %407 }
 0x474   : > { %v412_v43 = vsel %vm379_vm2, %v408_v42, %v1710_v38 }
 0x475   : > { %v422_v44 = vmul.f32 %v412_v43, %v1715_v39 }
 0x477   : > { %v645_v47 = vpop.permute.xlu1 %644 }
 0x478   : > { %v1524_v29 = vpop.eup %1523  ;;  %v650_v38 = vsel %vm379_vm2, %v645_v47, %v1728_v52 }
 0x479   : > { %v530_v36 = vsel %vm466_vm3, %v1524_v29, 0.0  ;;  %v660_v56 = vmul.f32 %v650_v38, %v1700_v33 }
 0x47a   : > { %v1526_v37 = vpop.eup %1525  ;;  %531 = vadd.xlane.f32.xlu0 %v530_v36 }
 0x47b   : > { %v533_v41 = vsel %vm466_vm3, %v1526_v37, 0.0  ;;  %v1807_v52 = vpop.permute.xlu1 %846 }
 0x47c   : > { %v852_v0 = vsel %vm379_vm2, %v1807_v52, %v645_v47 }
 0x47d   : > { %v862_v4 = vmul.f32 %v852_v0, %v1700_v33 }
 0x47e   : > { %534 = vadd.xlane.f32.xlu0 %v533_v41 }
 0x47f   : > { %v414_v10 = vpop.permute.xlu1 %413 }
 0x480   : > { %v419_v14 = vmul.f32 %v414_v10, %v1670_v26 }
 0x483   : > { %v653_v12 = vpop.permute.xlu1 %652 }
 0x484   : > { %v658_v19 = vmul.f32 %v653_v12, %v1670_v26 }
 0x494   : > { %405 = vrot.lane.b32.xlu0 %v1670_v26, %s1571_s30 }
 0x498   : > { %646 = vrot.lane.b32.xlu0 %v1674_v28, %s1572_s7 }
 0x49c   : > { %848 = vrot.lane.b32.xlu0 %v1674_v28, %s1573_s8 }
 0x4a0   : > { %415 = vrot.lane.b32.xlu0 %v1694_v32, %s1574_s9 }
 0x4a4   : > { %654 = vrot.lane.b32.xlu0 %v1694_v32, %s1575_s10 }
 0x4a8   : > { %427 = vrot.lane.b32.xlu0 %v422_v44, %s1574_s9 }
 0x507   : > { %v532_v45 = vpop.xlane.xlu0 %531 }
 0x508   : > { %1527 = vrcp.f32 %v532_v45 }
 0x50b   : > { %v535_v46 = vpop.xlane.xlu0 %534 }
 0x50c   : > { %1529 = vrcp.f32 %v535_v46 }
 0x50f   : > { %v406_v48 = vpop.permute.xlu0 %405 }
 0x510   : > { %v411_v49 = vsel %vm379_vm2, %v406_v48, %v1704_v35 }
 0x511   : > { %v421_v50 = vmul.f32 %v411_v49, %v1700_v33 }
 0x512   : > { %v1528_v54 = vpop.eup %1527 }
 0x513   : > { %v647_v51 = vpop.permute.xlu0 %646  ;;  %425 = vrot.lane.b32.xlu1 %v421_v50, %s1574_s9  ;;  %v538_v60 = vmul.f32 %v1528_v54, %v1524_v29 }
 0x514   : > { %v651_v55 = vsel %vm379_vm2, %v647_v51, %v1730_v53 }
 0x515   : > { %v661_v58 = vmul.f32 %v651_v55, %v1715_v39 }
 0x516   : > { %v1530_v59 = vpop.eup %1529 }
 0x517   : > { %v539_v61 = vmul.f32 %v1530_v59, %v1526_v37  ;;  %v1803_v35 = vpop.permute.xlu0 %848  ;;  %666 = vrot.lane.b32.xlu0 %v661_v58, %s1575_s10  ;;  %664 = vrot.lane.b32.xlu1 %v660_v56, %s1575_s10 }
 0x518   : > { %v853_v63 = vsel %vm379_vm2, %v1803_v35, %v647_v51 }
 0x519   : > { %v540_v53 = vpack.c.bf16 %v539_v61, %v538_v60  ;;  %v863_v3 = vmul.f32 %v853_v63, %v1715_v39 }
 0x51b   : > { %1412 = vmatmul.mubr.msk.bf16.vlgmr.msra.gmra.mrb[4].mxu1 %vm466_vm3, %v540_v53  ;;  %856 = vrot.lane.b32.xlu0 %v1694_v32, %s1570_s29  ;;  %v416_v5 = vpop.permute.xlu0 %415 }
 0x51c   : > { %854 = vrot.lane.b32.xlu1 %v1688_v31, %s1570_s29  ;;  %1416 = vmatpush3.bf16.msra.mxu1 %v1515_v62  ;;  %v420_v15 = vmul.f32 %v416_v5, %v1674_v28 }
 0x51d   : > { %1417 = vmatprep.mubr.msk.bf16.mxu1 %vm1564_vm1, %v1563_v8  ;;  %1421 = vmatprep.subr.bf16.mxu1 %v1563_v8 }
 0x51f   : > { %868 = vrot.lane.b32.xlu0 %v863_v3, %s1570_s29  ;;  %v655_v11 = vpop.permute.xlu0 %654 }
 0x520   : > { %866 = vrot.lane.b32.xlu1 %v862_v4, %s1570_s29  ;;  %v659_v20 = vmul.f32 %v655_v11, %v1674_v28 }
 0x523   : > { %v428_v13 = vpop.permute.xlu0 %427 }
 0x524   : > { %v432_v17 = vadd.f32 %v428_v13, %v420_v15 }
 0x585   : > { %v426_v16 = vpop.permute.xlu1 %425 }
 0x586   : > { %v431_v18 = vadd.f32 %v426_v16, %v419_v14  ;;  %v1058_v16 = vsel %vm379_vm2, %v1717_v40, %v1803_v35 }
 0x588   : > { %v433_v21 = vpack.c.bf16 %v432_v17, %v431_v18  ;;  %v1057_v17 = vsel %vm379_vm2, %v1702_v34, %v1807_v52  ;;  %v1068_v18 = vmul.f32 %v1058_v16, %v1715_v39 }
 0x589   : > { %v667_v22 = vpop.permute.xlu0 %666  ;;  %v665_v23 = vpop.permute.xlu1 %664 }
 0x58a   : > { %v671_v24 = vadd.f32 %v667_v22, %v659_v20  ;;  %v670_v25 = vadd.f32 %v665_v23, %v658_v19  ;;  %879 = vrot.lane.b32.xlu0 %v433_v21, %s1576_s13  ;;  %v1067_v19 = vmul.f32 %v1057_v17, %v1700_v33 }
 0x58c   : > { %v672_v27 = vpack.c.bf16 %v671_v24, %v670_v25 }
 0x58d   : > { %v857_v29 = vpop.permute.xlu0 %856 }
 0x58e   : > { %v855_v36 = vpop.permute.xlu1 %854  ;;  %674 = vrot.lane.b32.xlu1 %v672_v27, %s1577_s14  ;;  %v861_v37 = vmul.f32 %v857_v29, %v1674_v28 }
 0x58f   : > { %v860_v41 = vmul.f32 %v855_v36, %v1670_v26 }
 0x591   : > { %v869_v42 = vpop.permute.xlu0 %868 }
 0x592   : > { %v873_v43 = vadd.f32 %v869_v42, %v861_v37  ;;  %v867_v44 = vpop.permute.xlu1 %866 }
 0x593   : > { %v872_v45 = vadd.f32 %v867_v44, %v860_v41 }
 0x595   : > { %v874_v46 = vpack.c.bf16 %v873_v43, %v872_v45 }
 0x597   : > { %876 = vrot.lane.b32.xlu1 %v874_v46, %s1578_s15 }
 0x5ee   : > { %v582_v47 = vpop.f32.mrb[4].mxu1 }
 0x5ef   : > { %v1413_v48 = vpop.f32.mrb[5].mxu1 }
 0x5f0   : > { %v585_v49 = vpop.f32.mrb[6].mxu1 }
 0x5f1   : > { %v589_v50 = vpack.c.bf16 %v585_v49, %v582_v47  ;;  %v1414_v38 = vpop.f32.mrb[7].mxu1 }
 0x5f3   : > { %1418 = vmatmul.mubr.msk.bf16.vlgmr.msra.gmra.mrb[8].mxu1 %vm466_vm3, %v589_v50 }
 0x5f4   : > { %1422 = vmatpush3.bf16.xpose.msra.mxu1 %v1735_v57  ;;  %1423 = vmatprep.mubr.msk.bf16.mxu1 %vm1564_vm1, %v1563_v8 }
 0x5f5   : > { %1439 = vmatprep.subr.bf16.mxu1 %v1563_v8 }
 0x5fc   : > { %v880_v51 = vpop.permute.xlu0 %879 }
 0x5fd   : > { %v1841_v55 = vsel %vm466_vm3, %v880_v51, 0 }
 0x600   : > { %v675_v54 = vpop.permute.xlu1 %674 }
 0x601   : > { %1424 = vmatmul.mubr.msk.bf16.vlgmr.msra.gmra.mrb[12].mxu1 %vm466_vm3, %v675_v54 }
 0x602   : > { %1440 = vmatpush3.bf16.xpose.msra.mxu1 %v1841_v55  ;;  %1441 = vmatprep.mubr.msk.bf16.mxu1 %vm1564_vm1, %v1563_v8 }
 0x603   : > { %1445 = vmatprep.subr.bf16.mxu1 %v1563_v8 }
 0x609   : > { %v877_v57 = vpop.permute.xlu1 %876 }
 0x60a   : > { %1442 = vmatmul.mubr.msk.bf16.vlgmr.msra.gmra.mrb[16].mxu1 %vm466_vm3, %v877_v57 }
 0x60b   : > { %1447 = vmatprep.mubr.msk.bf16.mxu1 %vm1564_vm1, %v1563_v8 }
 0x6c6   : > { %v1851_v56 = vpop.f32.mrb[8].mxu1 }
 0x6c7   : > { %v1419_v58 = vpop.f32.mrb[9].mxu1 }
 0x6c8   : > { %v1853_v59 = vpop.f32.mrb[10].mxu1 }
 0x6c9   : > { %v1420_v60 = vpop.f32.mrb[11].mxu1 }
 0x6d4   : > { %v713_v61 = vpop.f32.mrb[12].mxu1 }
 0x6d5   : > { %v1425_v62 = vpop.f32.mrb[13].mxu1 }
 0x6d6   : > { %v716_v53 = vpop.f32.mrb[14].mxu1 }
 0x6d7   : > { %v1426_v63 = vpop.f32.mrb[15].mxu1  ;;  %v721_v42 = vmul.f32 0.25, %v716_v53 }
 0x6d9   : > { %v723_v43 = vsel %vm441_vm5, %v721_v42, -1e+30 }
 0x6da   : > { %v727_v45 = vsel %vm466_vm3, %v723_v43, -inf }
 0x6dd   : > { %v921_v0 = vpop.f32.mrb[16].mxu1 }
 0x6de   : > { %v928_v3 = vmul.f32 0.25, %v921_v0  ;;  %v1443_v4 = vpop.f32.mrb[17].mxu1 }
 0x6df   : > { %v924_v5 = vpop.f32.mrb[18].mxu1 }
 0x6e0   : > { %v929_v10 = vmul.f32 0.25, %v924_v5  ;;  %v1444_v11 = vpop.f32.mrb[19].mxu1  ;;  %v930_v12 = vsel %vm440_vm4, %v928_v3, -1e+30 }
 0x6e1   : > { %v932_v13 = vsel %vm466_vm3, %v930_v12, -inf }
 0x6e2   : > { %933 = vmax.xlane.f32.xlu0 %v932_v13  ;;  %v931_v14 = vsel %vm441_vm5, %v929_v10, -1e+30 }
 0x6e3   : > { %v935_v15 = vsel %vm466_vm3, %v931_v14, -inf }
 0x6e4   : > { %936 = vmax.xlane.f32.xlu1 %v935_v15 }
 0x6f5   : > { %1061 = vrot.lane.b32.xlu1 %v1694_v32, %s1576_s13 }
 0x6f8   : > { %1059 = vrot.lane.b32.xlu0 %v1688_v31, %s1576_s13 }
 0x6f9   : > { %1073 = vrot.lane.b32.xlu1 %v1068_v18, %s1576_s13 }
 0x6fc   : > { %1071 = vrot.lane.b32.xlu0 %v1067_v19, %s1576_s13 }
 0x76f   : > { %v934_v20 = vpop.xlane.xlu0 %933 }
 0x770   : > { %v938_v40 = vsub.f32 %v930_v12, %v934_v20 }
 0x771   : > { %v937_v35 = vpop.xlane.xlu1 %936 }
 0x772   : > { %v940_v21 = vmul.f32 1.442695, %v938_v40  ;;  %v939_v32 = vsub.f32 %v931_v14, %v937_v35 }
 0x773   : > { %v1060_v22 = vpop.permute.xlu0 %1059 }
 0x774   : > { %1531 = vpow2.f32 %v940_v21  ;;  %v942_v23 = vmul.f32 1.442695, %v939_v32  ;;  %v1065_v52 = vmul.f32 %v1060_v22, %v1670_v26  ;;  %v720_v26 = vmul.f32 0.25, %v713_v61 }
 0x775   : > { %v1062_v34 = vpop.permute.xlu1 %1061 }
 0x776   : > { %1533 = vpow2.f32 %v942_v23  ;;  %v1066_v31 = vmul.f32 %v1062_v34, %v1674_v28  ;;  %v722_v28 = vsel %vm440_vm4, %v720_v26, -1e+30 }
 0x777   : > { %v1072_v39 = vpop.permute.xlu0 %1071  ;;  %v724_v44 = vsel %vm466_vm3, %v722_v28, -inf }
 0x778   : > { %v1077_v25 = vadd.f32 %v1072_v39, %v1065_v52 }
 0x779   : > { %v1074_v24 = vpop.permute.xlu1 %1073 }
 0x77a   : > { %v1078_v33 = vadd.f32 %v1074_v24, %v1066_v31  ;;  %v1516_v31 = vld [vmem:[%s1954_s3 + $0x8] sm:$0xff]  }
 0x77c   : > { %v1079_v27 = vpack.c.bf16 %v1078_v33, %v1077_v25 }
 0x77e   : > { %v1532_v29 = vpop.eup %1531 }
 0x77f   : > { %v944_v36 = vsel %vm466_vm3, %v1532_v29, 0.0 }
 0x780   : > { %v1534_v37 = vpop.eup %1533  ;;  %945 = vadd.xlane.f32.xlu0 %v944_v36 }
 0x781   : > { %v947_v41 = vsel %vm466_vm3, %v1534_v37, 0.0 }
 0x782   : > { %948 = vadd.xlane.f32.xlu1 %v947_v41 }
 0x793   : > { %1081 = vrot.lane.b32.xlu1 %v1079_v27, %s1574_s9 }
 0x796   : > { %955 = vrot.lane.b32.xlu0 %v1678_v30, %s1575_s10 }
 0x7b5   : > { %725 = vmax.xlane.f32.xlu0 %v724_v44 }
 0x7b7   : > { %728 = vmax.xlane.f32.xlu1 %v727_v45 }
 0x80d   : > { %v946_v46 = vpop.xlane.xlu0 %945 }
 0x80e   : > { %1535 = vrcp.f32 %v946_v46 }
 0x80f   : > { %v949_v47 = vpop.xlane.xlu1 %948 }
 0x810   : > { %1537 = vrcp.f32 %v949_v47 }
 0x811   : > { %v1892_v30 = vpop.permute.xlu0 %955 }
 0x812   : > { %1446 = vmatpush3.bf16.msra.mxu1 %v1892_v30 }
 0x813   : > { %1457 = vmatprep.subr.bf16.mxu1 %v1563_v8  ;;  %v1082_v54 = vpop.permute.xlu1 %1081 }
 0x818   : > { %v1536_v48 = vpop.eup %1535 }
 0x819   : > { %v952_v50 = vmul.f32 %v1536_v48, %v1532_v29 }
 0x81a   : > { %v1538_v49 = vpop.eup %1537 }
 0x81b   : > { %v953_v38 = vmul.f32 %v1538_v49, %v1534_v37 }
 0x81d   : > { %v954_v51 = vpack.c.bf16 %v953_v38, %v952_v50  ;;  %v1518_v38 = vld [vmem:[%s1954_s3 + $0x18] sm:$0xff]  }
 0x81f   : > { %1448 = vmatmul.mubr.msk.bf16.vlgmr.msra.gmra.mrb[20].mxu1 %vm466_vm3, %v954_v51 }
 0x820   : > { %1458 = vmatpush3.bf16.xpose.msra.mxu1 %v1841_v55  ;;  %1459 = vmatprep.mubr.msk.bf16.mxu1 %vm1564_vm1, %v1563_v8 }
 0x827   : > { %1460 = vmatmul.mubr.msk.bf16.vlgmr.msra.gmra.mrb[24].mxu1 %vm466_vm3, %v1082_v54 }
 0x842   : > { %v726_v57 = vpop.xlane.xlu0 %725 }
 0x843   : > { %v730_v58 = vsub.f32 %v722_v28, %v726_v57  ;;  %v1517_v28 = vld [vmem:[%s1954_s3 + $0x10] sm:$0xff]  }
 0x844   : > { %v729_v60 = vpop.xlane.xlu1 %728 }
 0x845   : > { %v732_v61 = vmul.f32 1.442695, %v730_v58  ;;  %v731_v62 = vsub.f32 %v723_v43, %v729_v60 }
 0x847   : > { %1539 = vpow2.f32 %v732_v61  ;;  %v734_v53 = vmul.f32 1.442695, %v731_v62  ;;  %v642_v61 = vadd.f32 %v1630_v1, %v1851_v56 }
 0x849   : > { %1541 = vpow2.f32 %v734_v53  ;;  %v643_v53 = vadd.f32 %v1632_v2, %v1853_v59 }
 0x851   : > { %v1540_v63 = vpop.eup %1539 }
 0x852   : > { %v736_v0 = vsel %vm466_vm3, %v1540_v63, 0.0 }
 0x853   : > { %v1542_v3 = vpop.eup %1541  ;;  %737 = vadd.xlane.f32.xlu0 %v736_v0 }
 0x854   : > { %v739_v55 = vsel %vm466_vm3, %v1542_v3, 0.0 }
 0x857   : > { %740 = vadd.xlane.f32.xlu0 %v739_v55 }
 0x8e0   : > { %v738_v4 = vpop.xlane.xlu0 %737 }
 0x8e1   : > { %1543 = vrcp.f32 %v738_v4 }
 0x8e4   : > { %v741_v5 = vpop.xlane.xlu0 %740 }
 0x8e5   : > { %1545 = vrcp.f32 %v741_v5 }
 0x8eb   : > { %v1544_v10 = vpop.eup %1543 }
 0x8ec   : > { %v744_v12 = vmul.f32 %v1544_v10, %v1540_v63 }
 0x8ef   : > { %v1546_v11 = vpop.eup %1545 }
 0x8f0   : > { %v745_v13 = vmul.f32 %v1546_v11, %v1542_v3 }
 0x8f2   : > { %v995_v14 = vpop.f32.mrb[20].mxu1  ;;  %v746_v15 = vpack.c.bf16 %v745_v13, %v744_v12 }
 0x8f3   : > { %v1449_v16 = vpop.f32.mrb[21].mxu1 }
 0x8f4   : > { %1430 = vmatmul.mubr.msk.bf16.vlgmr.msra.gmra.mrb[4].mxu0 %vm466_vm3, %v746_v15  ;;  %v998_v17 = vpop.f32.mrb[22].mxu1 }
 0x8f5   : > { %v1002_v18 = vpack.c.bf16 %v998_v17, %v995_v14  ;;  %v1450_v19 = vpop.f32.mrb[23].mxu1  ;;  %1435 = vmatprep.mubr.msk.bf16.mxu0 %vm1564_vm1, %v1563_v8  ;;  %1434 = vmatpush3.bf16.msra.mxu0 %v1516_v31 }
 0x8f6   : > { %1451 = vmatprep.subr.bf16.mxu0 %v1563_v8 }
 0x8fa   : > { %v1120_v20 = vpop.f32.mrb[24].mxu1 }
 0x8fb   : > { %v1127_v40 = vmul.f32 0.25, %v1120_v20  ;;  %v1461_v35 = vpop.f32.mrb[25].mxu1 }
 0x8fc   : > { %v1123_v21 = vpop.f32.mrb[26].mxu1 }
 0x8fd   : > { %v1128_v32 = vmul.f32 0.25, %v1123_v21  ;;  %v1462_v22 = vpop.f32.mrb[27].mxu1  ;;  %v1129_v23 = vsel %vm440_vm4, %v1127_v40, -1e+30 }
 0x8fe   : > { %v1131_v34 = vsel %vm466_vm3, %v1129_v23, -inf }
 0x8ff   : > { %1132 = vmax.xlane.f32.xlu1 %v1131_v34  ;;  %v1130_v39 = vsel %vm441_vm5, %v1128_v32, -1e+30 }
 0x900   : > { %v1134_v52 = vsel %vm466_vm3, %v1130_v39, -inf }
 0x901   : > { %1135 = vmax.xlane.f32.xlu0 %v1134_v52 }
 0x98c   : > { %v1133_v24 = vpop.xlane.xlu1 %1132 }
 0x98d   : > { %v1137_v6 = vsub.f32 %v1129_v23, %v1133_v24 }
 0x98e   : > { %v1136_v25 = vpop.xlane.xlu0 %1135 }
 0x98f   : > { %v1139_v33 = vmul.f32 1.442695, %v1137_v6  ;;  %v1138_v27 = vsub.f32 %v1130_v39, %v1136_v25 }
 0x991   : > { %1547 = vpow2.f32 %v1139_v33  ;;  %v1141_v29 = vmul.f32 1.442695, %v1138_v27 }
 0x993   : > { %1549 = vpow2.f32 %v1141_v29 }
 0x99b   : > { %v1548_v7 = vpop.eup %1547 }
 0x99c   : > { %v1143_v9 = vsel %vm466_vm3, %v1548_v7, 0.0 }
 0x99d   : > { %v1550_v36 = vpop.eup %1549  ;;  %1144 = vadd.xlane.f32.xlu1 %v1143_v9 }
 0x99e   : > { %v1146_v37 = vsel %vm466_vm3, %v1550_v36, 0.0 }
 0x99f   : > { %1147 = vadd.xlane.f32.xlu0 %v1146_v37 }
 0x9c7   : > { %v784_v41 = vpop.f32.mrb[4].mxu0 }
 0x9c8   : > { %v1431_v26 = vpop.f32.mrb[5].mxu0 }
 0x9c9   : > { %v787_v42 = vpop.f32.mrb[6].mxu0 }
 0x9ca   : > { %v791_v43 = vpack.c.bf16 %v787_v42, %v784_v41  ;;  %v1432_v44 = vpop.f32.mrb[7].mxu0 }
 0x9cc   : > { %1436 = vmatmul.mubr.msk.bf16.vlgmr.msra.gmra.mrb[8].mxu0 %vm466_vm3, %v791_v43 }
 0x9cd   : > { %1452 = vmatpush3.bf16.msra.mxu0 %v1517_v28  ;;  %1453 = vmatprep.mubr.msk.bf16.mxu0 %vm1564_vm1, %v1563_v8 }
 0x9ce   : > { %1463 = vmatprep.subr.bf16.mxu0 %v1563_v8 }
 0x9d8   : > { %1454 = vmatmul.mubr.msk.bf16.vlgmr.msra.gmra.mrb[8].mxu0 %vm466_vm3, %v1002_v18 }
 0x9d9   : > { %1464 = vmatpush3.bf16.msra.mxu0 %v1892_v30  ;;  %1465 = vmatprep.mubr.msk.bf16.mxu0 %vm1564_vm1, %v1563_v8 }
 0x9da   : > { %1469 = vmatprep.subr.bf16.mxu0 %v1563_v8 }
 0xa2a   : > { %v1145_v45 = vpop.xlane.xlu1 %1144 }
 0xa2b   : > { %1551 = vrcp.f32 %v1145_v45 }
 0xa2c   : > { %v1148_v46 = vpop.xlane.xlu0 %1147 }
 0xa2d   : > { %1553 = vrcp.f32 %v1148_v46 }
 0xa35   : > { %v1552_v47 = vpop.eup %1551 }
 0xa36   : > { %v1151_v49 = vmul.f32 %v1552_v47, %v1548_v7 }
 0xa37   : > { %v1554_v48 = vpop.eup %1553 }
 0xa38   : > { %v1152_v50 = vmul.f32 %v1554_v48, %v1550_v36 }
 0xa3a   : > { %v1153_v51 = vpack.c.bf16 %v1152_v50, %v1151_v49 }
 0xa3c   : > { %1466 = vmatmul.mubr.msk.bf16.vlgmr.msra.gmra.mrb[12].mxu0 %vm466_vm3, %v1153_v51 }
 0xa3d   : > { %1470 = vmatpush3.bf16.msra.mxu0 %v1518_v38  ;;  %1471 = vmatprep.mubr.msk.bf16.mxu0 %vm1564_vm1, %v1563_v8 }
 0xb0f   : > { %v1191_v30 = vpop.f32.mrb[12].mxu0 }
 0xb10   : > { %v1467_v54 = vpop.f32.mrb[13].mxu0 }
 0xb11   : > { %v1194_v57 = vpop.f32.mrb[14].mxu0 }
 0xb12   : > { %v1198_v58 = vpack.c.bf16 %v1194_v57, %v1191_v30  ;;  %v1468_v60 = vpop.f32.mrb[15].mxu0 }
 0xb14   : > { %1472 = vmatmul.mubr.msk.bf16.vlgmr.msra.gmra.mrb[8].mxu0 %vm466_vm3, %v1198_v58 }
 0xbe7   : > { %v1244_v62 = vpop.f32.mrb[8].mxu0 }
 0xbe8   : > { %v1476_v63 = vadd.f32 %v1244_v62, %v642_v61  ;;  %v1473_v0 = vpop.f32.mrb[9].mxu0 }
 0xbe9   : > { %v1247_v8 = vpop.f32.mrb[10].mxu0 }
 0xbea   : > { %v1356_v3 = vpack.c.bf16 %v1476_v63, %v1476_v63  ;;  %v1478_v55 = vadd.f32 %v1247_v8, %v643_v53  ;;  %v1474_v4 = vpop.f32.mrb[11].mxu0 }
 0xbec   : > { %1262 = vst.msk [vmem:[%s251_s27] sm:$0xf] %vm1261_vm6, %v1356_v3  ;;  %v1357_v5 = vpack.c.bf16 %v1478_v55, %v1478_v55 }
 0xbee   : > { %1263 = vst.msk [vmem:[%s251_s27 + $0x4] sm:$0xf] %vm1261_vm6, %v1357_v5 }
 0xbef PF: > { %s16_s21 = sadd.s32 1, %s1561_s21  }
 0xbf0   : > { %p13_p4 = scmp.ge.s32.totalorder %s16_s21, 4  }
 0xbf2   :  { %15 = sbr.rel (!%p13_p4) target bundleno = 1 (0x1), region = 74 }

</bundles_post_ra>
